<compile_context>
chip_gen: v7x
topology: tpu7x:2x2x1
jax: 0.10.0
libtpu: 0.0.40
codegen_flags: <defaults>
</compile_context>

<pallas_src>
import functools
import math

import jax
import jax.numpy as jnp
from jax import lax
from jax.experimental import pallas as pl
from jax.experimental.pallas import tpu as pltpu


# ----------------------------------------------------------------------------
# Helpers
# ----------------------------------------------------------------------------
def _round_up(x, m):
    return ((x + m - 1) // m) * m


def _apply_act(x, act):
    if act == "relu":
        return jnp.maximum(x, 0.0)
    if act == "mish":
        # mish(x) = x * tanh(softplus(x)) with the PyTorch softplus threshold.
        sp = jnp.where(x > 20.0, x, jnp.log1p(jnp.exp(jnp.minimum(x, 20.0))))
        return x * jnp.tanh(sp)
    return x


# ----------------------------------------------------------------------------
# Pallas kernels
# ----------------------------------------------------------------------------
def _mm_kernel(a_ref, b_ref, bias_ref, o_ref, *, act):
    acc = jnp.dot(a_ref[...].astype(jnp.bfloat16), b_ref[...],
                  preferred_element_type=jnp.float32)
    acc = acc + bias_ref[...]
    o_ref[...] = _apply_act(acc, act)


def pmm(a, b, bias=None, act=None, block_m=512):
    """y = act(a @ b + bias).  a:[M,K] f32, b:[K,N] (stored bf16), bias:[N]."""
    a = jnp.asarray(a, jnp.float32)
    b = jnp.asarray(b, jnp.bfloat16)
    M, K = a.shape
    _, N = b.shape
    if bias is None:
        bias = jnp.zeros((N,), jnp.float32)
    bias2 = jnp.asarray(bias, jnp.float32).reshape(1, N)

    bm = min(block_m, _round_up(max(M, 1), 8))
    Mp = _round_up(M, bm)
    if Mp != M:
        a = jnp.pad(a, ((0, Mp - M), (0, 0)))

    out = pl.pallas_call(
        functools.partial(_mm_kernel, act=act),
        out_shape=jax.ShapeDtypeStruct((Mp, N), jnp.float32),
        grid=(Mp // bm,),
        in_specs=[
            pl.BlockSpec((bm, K), lambda i: (i, 0)),
            pl.BlockSpec((K, N), lambda i: (0, 0)),
            pl.BlockSpec((1, N), lambda i: (0, 0)),
        ],
        out_specs=pl.BlockSpec((bm, N), lambda i: (i, 0)),
        compiler_params=pltpu.CompilerParams(dimension_semantics=("parallel",)),
    )(a, b, bias2)
    return out[:M]


def _fused_mlp_kernel(*refs, n_layers, acts, log_softmax_out):
    x_ref = refs[0]
    w_refs = refs[1:1 + n_layers]
    b_refs = refs[1 + n_layers:1 + 2 * n_layers]
    o_ref = refs[1 + 2 * n_layers]
    h = x_ref[...]
    for i in range(n_layers):
        acc = jnp.dot(h.astype(jnp.bfloat16), w_refs[i][...],
                      preferred_element_type=jnp.float32)
        acc = acc + b_refs[i][...]
        h = _apply_act(acc, acts[i])
    if log_softmax_out:
        m = jnp.max(h, axis=-1, keepdims=True)
        z = h - m
        h = z - jnp.log(jnp.sum(jnp.exp(z), axis=-1, keepdims=True))
    o_ref[...] = h


def fused_mlp(x, weights, biases, acts, *, block_m=512,
              log_softmax_out=False, pad_out=False):
    """y = actN(...act1(x @ W1 + b1)... @ WN + bN).  All layers chained in VMEM.
    weights[i]: [K_i, N_i] (stored bf16), biases[i]: [N_i]."""
    x = jnp.asarray(x, jnp.float32)
    M, K0 = x.shape
    n = len(weights)
    ws = [jnp.asarray(w, jnp.bfloat16) for w in weights]
    bs = [jnp.asarray(b, jnp.float32).reshape(1, -1) for b in biases]
    N_out = ws[-1].shape[1]
    N_store = _round_up(N_out, 128) if (pad_out and not log_softmax_out) else N_out
    if N_store != N_out:
        ws[-1] = jnp.pad(ws[-1], ((0, 0), (0, N_store - N_out)))
        bs[-1] = jnp.pad(bs[-1], ((0, 0), (0, N_store - N_out)))

    bm = min(block_m, _round_up(max(M, 1), 8))
    Mp = _round_up(M, bm)
    if Mp != M:
        x = jnp.pad(x, ((0, Mp - M), (0, 0)))

    in_specs = [pl.BlockSpec((bm, K0), lambda i: (i, 0))]
    for w in ws:
        in_specs.append(pl.BlockSpec(w.shape, lambda i: (0, 0)))
    for b in bs:
        in_specs.append(pl.BlockSpec(b.shape, lambda i: (0, 0)))

    out = pl.pallas_call(
        functools.partial(_fused_mlp_kernel, n_layers=n, acts=tuple(acts),
                          log_softmax_out=log_softmax_out),
        out_shape=jax.ShapeDtypeStruct((Mp, N_store), jnp.float32),
        grid=(Mp // bm,),
        in_specs=in_specs,
        out_specs=pl.BlockSpec((bm, N_store), lambda i: (i, 0)),
        compiler_params=pltpu.CompilerParams(dimension_semantics=("parallel",)),
    )(x, *ws, *bs)
    return out[:M, :N_out]


def _attn_kernel(q_ref, k_ref, v_ref, o_ref, *, scale, nhead):
    E = q_ref.shape[-1]
    Dh = E // nhead
    q = q_ref[0]
    k = k_ref[0]
    v = v_ref[0]
    outs = []
    for h in range(nhead):
        qh = q[:, h * Dh:(h + 1) * Dh].astype(jnp.bfloat16)
        kh = k[:, h * Dh:(h + 1) * Dh].astype(jnp.bfloat16)
        vh = v[:, h * Dh:(h + 1) * Dh].astype(jnp.bfloat16)
        s = jnp.dot(qh, kh.T, preferred_element_type=jnp.float32) * scale
        m = jnp.max(s, axis=-1, keepdims=True)
        p = jnp.exp(s - m)
        inv = pl.reciprocal(jnp.sum(p, axis=-1, keepdims=True), approx=True)
        p = p * inv
        outs.append(jnp.dot(p.astype(jnp.bfloat16), vh,
                            preferred_element_type=jnp.float32))
    o_ref[0] = jnp.concatenate(outs, axis=-1)   # lane-dense [L, E] store


def mha_attention(q, k, v, scale, nhead):
    """q:[B,L,E]  k,v:[B,S,E] -> [B,L,E]; heads are contiguous E-chunks of width E/nhead."""
    B, L, E = q.shape
    S = k.shape[1]
    return pl.pallas_call(
        functools.partial(_attn_kernel, scale=scale, nhead=nhead),
        out_shape=jax.ShapeDtypeStruct((B, L, E), jnp.float32),
        grid=(B,),
        in_specs=[
            pl.BlockSpec((1, L, E), lambda i: (i, 0, 0)),
            pl.BlockSpec((1, S, E), lambda i: (i, 0, 0)),
            pl.BlockSpec((1, S, E), lambda i: (i, 0, 0)),
        ],
        out_specs=pl.BlockSpec((1, L, E), lambda i: (i, 0, 0)),
        compiler_params=pltpu.CompilerParams(dimension_semantics=("parallel",)),
    )(q.astype(jnp.float32), k.astype(jnp.float32), v.astype(jnp.float32))


def _ln_kernel(x_ref, g_ref, b_ref, o_ref, *, eps):
    x = x_ref[...]
    mu = jnp.mean(x, axis=-1, keepdims=True)
    var = jnp.mean((x - mu) ** 2, axis=-1, keepdims=True)
    o_ref[...] = (x - mu) * lax.rsqrt(var + eps) * g_ref[...] + b_ref[...]


def layer_norm(x, gamma, beta, eps=1e-5):
    shape = x.shape
    D = shape[-1]
    x2 = x.reshape(-1, D).astype(jnp.float32)
    M = x2.shape[0]
    bm = min(512, _round_up(max(M, 1), 8))
    Mp = _round_up(M, bm)
    if Mp != M:
        x2 = jnp.pad(x2, ((0, Mp - M), (0, 0)))
    out = pl.pallas_call(
        functools.partial(_ln_kernel, eps=eps),
        out_shape=jax.ShapeDtypeStruct((Mp, D), jnp.float32),
        grid=(Mp // bm,),
        in_specs=[
            pl.BlockSpec((bm, D), lambda i: (i, 0)),
            pl.BlockSpec((1, D), lambda i: (0, 0)),
            pl.BlockSpec((1, D), lambda i: (0, 0)),
        ],
        out_specs=pl.BlockSpec((bm, D), lambda i: (i, 0)),
        compiler_params=pltpu.CompilerParams(dimension_semantics=("parallel",)),
    )(x2, gamma.reshape(1, D), beta.reshape(1, D))
    return out[:M].reshape(shape)


# ----------------------------------------------------------------------------
# Parameter helpers (deterministic synthetic init)
# ----------------------------------------------------------------------------
class Init:
    def __init__(self, seed):
        self.key = jax.random.PRNGKey(seed)

    def normal(self, shape, scale):
        self.key, sub = jax.random.split(self.key)
        return scale * jax.random.normal(sub, shape, jnp.float32)

    def kaiming(self, shape):  # (out, in) weight convention
        return self.normal(shape, math.sqrt(2.0 / shape[-1]))


def bn_params(c):
    # (gamma, beta, running_mean, running_var, eps) -- eval-mode stats
    return (jnp.ones((c,), jnp.float32), jnp.zeros((c,), jnp.float32),
            jnp.zeros((c,), jnp.float32), jnp.ones((c,), jnp.float32), 1e-5)


def fold_bn(w, b, bn):
    gamma, beta, rm, rv, eps = bn
    s = gamma / jnp.sqrt(rv + eps)
    return w * s[:, None], (b - rm) * s + beta


def ln_params(E):
    return (jnp.ones((E,), jnp.float32), jnp.zeros((E,), jnp.float32))


def mha_params(rng, E):
    s = 1.0 / math.sqrt(E)
    return dict(in_w=rng.normal((3 * E, E), s), in_b=jnp.zeros((3 * E,), jnp.float32),
                out_w=rng.normal((E, E), s), out_b=jnp.zeros((E,), jnp.float32))


def encoder_layer_params(rng, E, ff):
    return dict(attn=mha_params(rng, E),
                lin1_w=rng.kaiming((ff, E)), lin1_b=jnp.zeros((ff,), jnp.float32),
                lin2_w=rng.kaiming((E, ff)), lin2_b=jnp.zeros((E,), jnp.float32),
                norm1=ln_params(E), norm2=ln_params(E))


def decoder_layer_params(rng, E, ff):
    return dict(self_attn=mha_params(rng, E), cross_attn=mha_params(rng, E),
                lin1_w=rng.kaiming((ff, E)), lin1_b=jnp.zeros((ff,), jnp.float32),
                lin2_w=rng.kaiming((E, ff)), lin2_b=jnp.zeros((E,), jnp.float32),
                norm1=ln_params(E), norm2=ln_params(E), norm3=ln_params(E))


def last_layer_params(rng, E, hid, out):
    return dict(self_attn=mha_params(rng, E), cross_attn=mha_params(rng, E),
                lin1_w=rng.kaiming((hid, E)), lin1_b=jnp.zeros((hid,), jnp.float32),
                lin2_w=rng.kaiming((out, hid)), lin2_b=jnp.zeros((out,), jnp.float32),
                norm1=ln_params(E), norm2=ln_params(E))


def make_sa_params(rng, in_channel, mlp_list):
    branches = []
    for mlp in mlp_list:
        last = in_channel + 3
        layers = []
        for out in mlp:
            layers.append(dict(w=rng.kaiming((out, last)),
                               b=jnp.zeros((out,), jnp.float32),
                               bn=bn_params(out)))
            last = out
        branches.append(layers)
    return dict(branch=branches)


def build_params(rng, cfg):
    input_dim = 6
    d_model = cfg["d_m"]
    P = {}
    # sort_cnn: Conv2d(1,64,(6,1)) ; Conv2d(64,128,1x1)  + BN
    P["sort_cnn"] = [dict(w=rng.kaiming((64, input_dim)), b=jnp.zeros((64,), jnp.float32)),
                     dict(w=rng.kaiming((128, 64)), b=jnp.zeros((128,), jnp.float32))]
    P["sort_bn"] = [bn_params(64), bn_params(128)]
    # input self-attention encoder layer (d=128, nhead=8, dim_ff=2048 default)
    P["input_sa_layer"] = encoder_layer_params(rng, 128, 2048)
    # SortNets: Conv2d(1,64,(128,1)); Conv2d(64,16,1); Conv2d(16,1,1) + BN each
    P["sortnets"] = []
    for _ in range(cfg["M"]):
        convs = [dict(w=rng.kaiming((64, 128)), b=jnp.zeros((64,), jnp.float32)),
                 dict(w=rng.kaiming((16, 64)), b=jnp.zeros((16,), jnp.float32)),
                 dict(w=rng.kaiming((1, 16)), b=jnp.zeros((1,), jnp.float32))]
        bns = [bn_params(64), bn_params(16), bn_params(1)]
        P["sortnets"].append(dict(convs=convs, bns=bns))
    # radius_cnn: Conv3d(1,128,(1,17,6)); Conv3d(128,256,1); Conv3d(256, d_model-7, 1)
    rc = d_model - 1 - input_dim
    P["radius_cnn"] = [dict(w=rng.kaiming((128, 17 * input_dim)), b=jnp.zeros((128,), jnp.float32)),
                       dict(w=rng.kaiming((256, 128)), b=jnp.zeros((256,), jnp.float32)),
                       dict(w=rng.kaiming((rc, 256)), b=jnp.zeros((rc,), jnp.float32))]
    P["radius_bn"] = [bn_params(128), bn_params(256), bn_params(rc)]
    # PointNet++ MSG abstraction layers
    P["sa1"] = make_sa_params(rng, 3, [[32, 32, 64], [64, 64, 128], [64, 96, 128]])
    P["sa2"] = make_sa_params(rng, 320, [[32, 64, 128], [64, 64, 128], [64, 128, 253]])
    # nn.Transformer: 1 encoder layer (dim_ff=512) + final LN; custom decoder
    P["enc_layer"] = encoder_layer_params(rng, d_model, 512)
    P["enc_norm"] = ln_params(d_model)
    P["dec_layer"] = decoder_layer_params(rng, d_model, 2048)
    P["last_layer"] = last_layer_params(rng, d_model, 256, 64)
    # classification head
    dims = [64 * cfg["M"] * cfg["K"], 512, 128, 40]
    P["flatten_linear"] = [dict(w=rng.kaiming((dims[i + 1], dims[i])),
                                b=jnp.zeros((dims[i + 1],), jnp.float32)) for i in range(3)]
    P["flatten_bn"] = [bn_params(dims[i + 1]) for i in range(3)]
    return P


# ----------------------------------------------------------------------------
# Point-cloud utilities (plain JAX glue: gathers / sorts / FPS)
# ----------------------------------------------------------------------------
def index_points(points, idx):
    """points:[B,N,C], idx:[B,...] -> [B,...,C]"""
    B = points.shape[0]
    bidx = jnp.arange(B).reshape((B,) + (1,) * (idx.ndim - 1))
    bidx = jnp.broadcast_to(bidx, idx.shape)
    return points[bidx, idx]


def square_distance(src, dst):
    """src:[B,N,C], dst:[B,M,C] -> [B,N,M].  C=3: keep on XLA/VPU, not the MXU."""
    inner = jnp.einsum("bnc,bmc->bnm", src, dst)
    dist = -2.0 * inner
    dist = dist + jnp.sum(src ** 2, axis=-1)[:, :, None]
    dist = dist + jnp.sum(dst ** 2, axis=-1)[:, None, :]
    return dist


def query_ball_point(radius, nsample, xyz, new_xyz):
    B, N, _ = xyz.shape
    S = new_xyz.shape[1]
    sqrdists = square_distance(new_xyz, xyz)
    group_idx = jnp.broadcast_to(jnp.arange(N, dtype=jnp.int32), (B, S, N))
    group_idx = jnp.where(sqrdists > radius ** 2, N, group_idx)
    group_idx = jnp.sort(group_idx, axis=-1)[:, :, :nsample]
    group_first = jnp.broadcast_to(group_idx[:, :, :1], group_idx.shape)
    group_idx = jnp.where(group_idx == N, group_first, group_idx)
    return group_idx


def farthest_point_sample(xyz, npoint):
    """xyz:[B,N,3] -> [B,npoint] int32.
    TODO(synk): torch seeds `farthest` with randint; we use index 0 for determinism."""
    B, N, _ = xyz.shape

    def body(i, state):
        centroids, distance, farthest = state
        centroids = centroids.at[:, i].set(farthest)
        centroid = xyz[jnp.arange(B), farthest][:, None, :]
        dist = jnp.sum((xyz - centroid) ** 2, axis=-1)
        distance = jnp.minimum(distance, dist)
        farthest = jnp.argmax(distance, axis=-1).astype(jnp.int32)
        return centroids, distance, farthest

    centroids = jnp.zeros((B, npoint), jnp.int32)
    distance = jnp.full((B, N), 1e10, jnp.float32)
    farthest = jnp.zeros((B,), jnp.int32)
    centroids, _, _ = lax.fori_loop(0, npoint, body, (centroids, distance, farthest))
    return centroids


def _fold_chain(layers):
    """layers: list of (w[out,in], b[out], bn) -> (weights [in,out] list, biases list)."""
    ws, bs = [], []
    for w, b, bn in layers:
        if bn is not None:
            w, b = fold_bn(w, b, bn)
        ws.append(w.T)
        bs.append(b)
    return ws, bs


def pointnet_sa_msg(xyz, points, params, npoint, radius_list, nsample_list):
    """Standard PointNet++ MSG set abstraction.  xyz:[B,3,N]  points:[B,D,N] or None."""
    xyz_t = xyz.transpose(0, 2, 1)
    points_t = points.transpose(0, 2, 1) if points is not None else None
    B, N, _ = xyz_t.shape
    S = npoint
    fps_idx = farthest_point_sample(xyz_t, S)
    new_xyz = index_points(xyz_t, fps_idx)  # [B,S,3]
    feats = []
    for i, radius in enumerate(radius_list):
        K = nsample_list[i]
        group_idx = query_ball_point(radius, K, xyz_t, new_xyz)       # [B,S,K]
        grouped_xyz = index_points(xyz_t, group_idx) - new_xyz[:, :, None, :]
        if points_t is not None:
            grouped_points = index_points(points_t, group_idx)
            grouped = jnp.concatenate([grouped_points, grouped_xyz], axis=-1)
        else:
            grouped = grouped_xyz
        Cin = grouped.shape[-1]
        h = grouped.reshape(B * S * K, Cin)
        ws, bs = _fold_chain([(l["w"], l["b"], l["bn"]) for l in params["branch"][i]])
        h = fused_mlp(h, ws, bs, acts=("relu",) * len(ws))
        h = h.reshape(B, S, K, -1)
        feats.append(jnp.max(h, axis=2))                              # max over neighbors
    new_points = jnp.concatenate(feats, axis=-1)                      # [B,S,Cout]
    return new_xyz.transpose(0, 2, 1), new_points.transpose(0, 2, 1)


# ----------------------------------------------------------------------------
# Transformer building blocks (projections / attention / LN via Pallas)
# ----------------------------------------------------------------------------
def multihead_attn(query, key_, value, p, nhead):
    L, B, E = query.shape
    S = key_.shape[0]
    in_w, in_b = p["in_w"], p["in_b"]
    if (query is key_) and (key_ is value):
        # fused QKV projection: one launch, lane-dense 3E output
        qkv = pmm(query.reshape(L * B, E), in_w.T, in_b)              # [L*B, 3E]
        q, k, v = qkv[:, :E], qkv[:, E:2 * E], qkv[:, 2 * E:]
    else:
        q = pmm(query.reshape(L * B, E), in_w[:E].T, in_b[:E])
        kv = pmm(key_.reshape(S * B, E), in_w[E:].T, in_b[E:])        # fused KV
        k, v = kv[:, :E], kv[:, E:]
    Dh = E // nhead
    scale = 1.0 / math.sqrt(Dh)
    qb = q.reshape(L, B, E).transpose(1, 0, 2)                        # [B,L,E]
    kb = k.reshape(S, B, E).transpose(1, 0, 2)
    vb = v.reshape(S, B, E).transpose(1, 0, 2)
    o = mha_attention(qb, kb, vb, scale, nhead)                       # [B,L,E]
    o = o.transpose(1, 0, 2).reshape(L * B, E)
    o = pmm(o, p["out_w"].T, p["out_b"])
    return o.reshape(L, B, E)


def transformer_encoder_layer(src, p, nhead):
    L, B, E = src.shape
    a = multihead_attn(src, src, src, p["attn"], nhead)
    x = layer_norm(src + a, *p["norm1"])
    h = fused_mlp(x.reshape(L * B, E),
                  [p["lin1_w"].T, p["lin2_w"].T],
                  [p["lin1_b"], p["lin2_b"]],
                  acts=("relu", None)).reshape(L, B, E)
    return layer_norm(x + h, *p["norm2"])


def transformer_decoder_layer(tgt, memory, p, nhead):
    L, B, E = tgt.shape
    a = multihead_attn(tgt, tgt, tgt, p["self_attn"], nhead)
    x = layer_norm(tgt + a, *p["norm1"])
    a = multihead_attn(x, memory, memory, p["cross_attn"], nhead)
    x = layer_norm(x + a, *p["norm2"])
    h = fused_mlp(x.reshape(L * B, E),
                  [p["lin1_w"].T, p["lin2_w"].T],
                  [p["lin1_b"], p["lin2_b"]],
                  acts=("relu", None)).reshape(L, B, E)
    return layer_norm(x + h, *p["norm3"])


def pt_decoder_last_layer(tgt, memory, p, nhead):
    L, B, E = tgt.shape
    a = multihead_attn(tgt, tgt, tgt, p["self_attn"], nhead)
    x = layer_norm(tgt + a, *p["norm1"])
    a = multihead_attn(x, memory, memory, p["cross_attn"], nhead)
    x = layer_norm(x + a, *p["norm2"])
    h = fused_mlp(x.reshape(L * B, E),
                  [p["lin1_w"].T, p["lin2_w"].T],
                  [p["lin1_b"], p["lin2_b"]],
                  acts=("relu", None))                                # [L*B, 64]
    return h.reshape(L, B, -1)


# ----------------------------------------------------------------------------
# SortNet and the full Point_Transformer forward
# ----------------------------------------------------------------------------
def sortnet_forward(x_local, inp, p, top_k):
    """x_local:[B,128,N] (sortvec), inp:[B,6,N] -> (feat [B,7,K], idx [B,K])."""
    B, Cf, N = x_local.shape
    h = x_local.transpose(0, 2, 1).reshape(B * N, Cf)
    ws, bs = _fold_chain([(c["w"], c["b"], bn) for c, bn in zip(p["convs"], p["bns"])])
    h = fused_mlp(h, ws, bs, acts=("mish",) * len(ws))                # fused 128->64->16->1
    sortvec = h.reshape(B, N, 1).transpose(0, 2, 1)                   # [B,1,N]
    _, idx = lax.top_k(sortvec[:, 0, :], top_k)                       # [B,K]
    sorted_input = index_points(inp.transpose(0, 2, 1), idx).transpose(0, 2, 1)      # [B,6,K]
    sorted_score = index_points(sortvec.transpose(0, 2, 1), idx).transpose(0, 2, 1)  # [B,1,K]
    return jnp.concatenate([sorted_input, sorted_score], axis=1), idx


def point_transformer_forward(params, x, cfg):
    B, C, N = x.shape
    xyz = x[:, :3, :]
    norm = x[:, 3:, :]

    # --- PointNet++ MSG global feature path ---
    l1_xyz, l1_points = pointnet_sa_msg(xyz, norm, params["sa1"],
                                        256, [0.1, 0.2, 0.4], [16, 32, 64])
    l2_xyz, l2_points = pointnet_sa_msg(l1_xyz, l1_points, params["sa2"],
                                        128, [0.2, 0.4, 0.6], [32, 64, 128])
    global_feat = jnp.concatenate([l2_xyz, l2_points], axis=1)        # [B,512,128]

    # --- local rFF (sort_cnn): Conv2d(1,64,(6,1)) -> Conv2d(64,128,1x1), BN + Mish fused ---
    x_t = x.transpose(0, 2, 1).reshape(B * N, C)
    ws, bs = _fold_chain([(c["w"], c["b"], bn)
                          for c, bn in zip(params["sort_cnn"], params["sort_bn"])])
    h = fused_mlp(x_t, ws, bs, acts=("mish", "mish"))                 # [B*N,128]
    x_local_seq = h.reshape(B, N, 128).transpose(1, 0, 2)             # [N,B,128]

    # --- input self-attention layer ---
    x_local_seq = transformer_encoder_layer(x_local_seq, params["input_sa_layer"], nhead=8)
    x_local = x_local_seq.transpose(1, 2, 0)                          # [B,128,N]

    # --- SortNets (top-K selection) ---
    feats = [sortnet_forward(x_local, x, sp, cfg["K"])[0] for sp in params["sortnets"]]
    x_local_sorted_all = jnp.concatenate(feats, axis=-1)              # [B,7,M*K]
    x_local_scores = x_local_sorted_all[:, 6:, :].transpose(0, 2, 1)  # [B,MK,1]
    x_local_sorted = x_local_sorted_all[:, :6, :].transpose(0, 2, 1)  # [B,MK,6]

    # --- radius grouping around selected points ---
    all_points = x.transpose(0, 2, 1)                                 # [B,N,6]
    query_points = x_local_sorted
    radius_indices = query_ball_point(0.1, 16, all_points[:, :, :3], query_points[:, :, :3])
    radius_points = index_points(all_points, radius_indices)          # [B,MK,16,6]
    radius_centroids = query_points[:, :, None, :]
    radius_grouped = jnp.concatenate([radius_centroids, radius_points], axis=2)  # [B,MK,17,6]
    MK = radius_grouped.shape[1]

    # radius_cnn: Conv3d(1,128,(1,17,6)) -> 1x1x1 convs, BN + Mish; 3-layer chain fused,
    # output padded to a lane-dense 512-wide store and sliced back to 505.
    g = radius_grouped.reshape(B * MK, 17 * 6)
    ws, bs = _fold_chain([(c["w"], c["b"], bn)
                          for c, bn in zip(params["radius_cnn"], params["radius_bn"])])
    g = fused_mlp(g, ws, bs, acts=("mish",) * len(ws), pad_out=True)
    radius_feat = g.reshape(B, MK, -1).transpose(0, 2, 1)             # [B,505,MK]

    radius_cat = jnp.concatenate([x_local_sorted.transpose(0, 2, 1),
                                  radius_feat,
                                  x_local_scores.transpose(0, 2, 1)], axis=1)  # [B,512,MK]

    # --- nn.Transformer: 1 encoder layer + final LN, custom decoder (1 layer + last layer) ---
    source = global_feat.transpose(2, 0, 1)                           # [128,B,512]
    target = radius_cat.transpose(2, 0, 1)                            # [MK,B,512]
    memory = transformer_encoder_layer(source, params["enc_layer"], nhead=8)
    memory = layer_norm(memory, *params["enc_norm"])
    dec = transformer_decoder_layer(target, memory, params["dec_layer"], nhead=8)
    emb = pt_decoder_last_layer(dec, memory, params["last_layer"], nhead=8)    # [MK,B,64]

    # --- classification head (3 linears + BN/mish folded + log-softmax fused) ---
    out = emb.transpose(1, 2, 0).reshape(B, -1)                       # [B, 64*MK]
    n_lin = len(params["flatten_linear"])
    ws, bs, acts = [], [], []
    for i, lp in enumerate(params["flatten_linear"]):
        if i < n_lin - 1:
            w, b = fold_bn(lp["w"], lp["b"], params["flatten_bn"][i])
            acts.append("mish")                                       # dropout = identity (eval)
        else:
            w, b = lp["w"], lp["b"]
            acts.append(None)
        ws.append(w.T)
        bs.append(b)
    out = fused_mlp(out, ws, bs, acts=acts, log_softmax_out=True)     # [B,40]
    return out


# ----------------------------------------------------------------------------
if __name__ == "__main__":
    # small config consistent with the module: use_normals=True -> 6 input channels,
    # d_m must be 512 (3 + 128 + 128 + 253 from sa2), M=2 sortnets, K=4 top-k.
    cfg = dict(M=2, K=4, d_m=512, use_normals=True, dropout=0.5)
    B, N = 2, 256

    params = build_params(Init(0), cfg)
    x = jax.random.normal(jax.random.PRNGKey(0), (B, 6, N), jnp.float32)

    out = point_transformer_forward(params, x, cfg)
    out = jax.block_until_ready(out)
    assert out.shape == (B, 40), out.shape
    assert bool(jnp.all(jnp.isfinite(out)))
    print("KERNEL_OK")
</pallas_src>

<mosaic_0001>
module attributes {stable_mosaic.version = 11 : i64} {
  func.func @_fused_mlp_kernel(%arg0: i32, %arg1: memref<512x6xf32, #tpu.memory_space<vmem>>, %arg2: memref<6x32xbf16, #tpu.memory_space<vmem>>, %arg3: memref<32x32xbf16, #tpu.memory_space<vmem>>, %arg4: memref<32x64xbf16, #tpu.memory_space<vmem>>, %arg5: memref<1x32xf32, #tpu.memory_space<vmem>>, %arg6: memref<1x32xf32, #tpu.memory_space<vmem>>, %arg7: memref<1x64xf32, #tpu.memory_space<vmem>>, %arg8: memref<512x64xf32, #tpu.memory_space<vmem>>) attributes {dimension_semantics = [#tpu.dimension_semantics<parallel>], iteration_bounds = array<i64: 16>, scalar_prefetch = 0 : i64, scratch_operands = 0 : i64, tpu.core_type = #tpu.core_type<tc>, window_params = [{transform_indices = @transform_0, window_bounds = array<i64: 512, 6>}, {pipeline_mode = #tpu.pipeline_mode<synchronous>, transform_indices = @transform_1, window_bounds = array<i64: 6, 32>}, {pipeline_mode = #tpu.pipeline_mode<synchronous>, transform_indices = @transform_2, window_bounds = array<i64: 32, 32>}, {pipeline_mode = #tpu.pipeline_mode<synchronous>, transform_indices = @transform_3, window_bounds = array<i64: 32, 64>}, {pipeline_mode = #tpu.pipeline_mode<synchronous>, transform_indices = @transform_4, window_bounds = array<i64: 1, 32>}, {pipeline_mode = #tpu.pipeline_mode<synchronous>, transform_indices = @transform_5, window_bounds = array<i64: 1, 32>}, {pipeline_mode = #tpu.pipeline_mode<synchronous>, transform_indices = @transform_6, window_bounds = array<i64: 1, 64>}, {transform_indices = @transform_7, window_bounds = array<i64: 512, 64>}]} {
    %c0 = arith.constant 0 : index
    %c0_0 = arith.constant 0 : index
    %0 = vector.load %arg1[%c0, %c0_0] : memref<512x6xf32, #tpu.memory_space<vmem>>, vector<512x6xf32>
    %1 = arith.truncf %0 : vector<512x6xf32> to vector<512x6xbf16>
    %c0_1 = arith.constant 0 : index
    %c0_2 = arith.constant 0 : index
    %2 = vector.load %arg2[%c0_1, %c0_2] : memref<6x32xbf16, #tpu.memory_space<vmem>>, vector<6x32xbf16>
    %cst = arith.constant dense<0.000000e+00> : vector<512x32xf32>
    %3 = tpu.matmul %1, %2, %cst {dimension_numbers = #tpu.dot_dimension_numbers<[1], [0], [0], [1], [0, 0, 1, 1], [], []>} : vector<512x6xbf16>, vector<6x32xbf16>, vector<512x32xf32> -> vector<512x32xf32>
    %c0_3 = arith.constant 0 : index
    %c0_4 = arith.constant 0 : index
    %4 = vector.load %arg5[%c0_3, %c0_4] : memref<1x32xf32, #tpu.memory_space<vmem>>, vector<1x32xf32>
    %5 = vector.broadcast %4 : vector<1x32xf32> to vector<512x32xf32>
    %6 = arith.addf %3, %5 : vector<512x32xf32>
    %cst_5 = arith.constant 0.000000e+00 : f32
    %7 = vector.broadcast %cst_5 : f32 to vector<512x32xf32>
    %8 = arith.maximumf %6, %7 : vector<512x32xf32>
    %9 = arith.truncf %8 : vector<512x32xf32> to vector<512x32xbf16>
    %c0_6 = arith.constant 0 : index
    %c0_7 = arith.constant 0 : index
    %10 = vector.load %arg3[%c0_6, %c0_7] : memref<32x32xbf16, #tpu.memory_space<vmem>>, vector<32x32xbf16>
    %cst_8 = arith.constant dense<0.000000e+00> : vector<512x32xf32>
    %11 = tpu.matmul %9, %10, %cst_8 {dimension_numbers = #tpu.dot_dimension_numbers<[1], [0], [0], [1], [0, 0, 1, 1], [], []>} : vector<512x32xbf16>, vector<32x32xbf16>, vector<512x32xf32> -> vector<512x32xf32>
    %c0_9 = arith.constant 0 : index
    %c0_10 = arith.constant 0 : index
    %12 = vector.load %arg6[%c0_9, %c0_10] : memref<1x32xf32, #tpu.memory_space<vmem>>, vector<1x32xf32>
    %13 = vector.broadcast %12 : vector<1x32xf32> to vector<512x32xf32>
    %14 = arith.addf %11, %13 : vector<512x32xf32>
    %cst_11 = arith.constant 0.000000e+00 : f32
    %15 = vector.broadcast %cst_11 : f32 to vector<512x32xf32>
    %16 = arith.maximumf %14, %15 : vector<512x32xf32>
    %17 = arith.truncf %16 : vector<512x32xf32> to vector<512x32xbf16>
    %c0_12 = arith.constant 0 : index
    %c0_13 = arith.constant 0 : index
    %18 = vector.load %arg4[%c0_12, %c0_13] : memref<32x64xbf16, #tpu.memory_space<vmem>>, vector<32x64xbf16>
    %cst_14 = arith.constant dense<0.000000e+00> : vector<512x64xf32>
    %19 = tpu.matmul %17, %18, %cst_14 {dimension_numbers = #tpu.dot_dimension_numbers<[1], [0], [0], [1], [0, 0, 1, 1], [], []>} : vector<512x32xbf16>, vector<32x64xbf16>, vector<512x64xf32> -> vector<512x64xf32>
    %c0_15 = arith.constant 0 : index
    %c0_16 = arith.constant 0 : index
    %20 = vector.load %arg7[%c0_15, %c0_16] : memref<1x64xf32, #tpu.memory_space<vmem>>, vector<1x64xf32>
    %21 = vector.broadcast %20 : vector<1x64xf32> to vector<512x64xf32>
    %22 = arith.addf %19, %21 : vector<512x64xf32>
    %cst_17 = arith.constant 0.000000e+00 : f32
    %23 = vector.broadcast %cst_17 : f32 to vector<512x64xf32>
    %24 = arith.maximumf %22, %23 : vector<512x64xf32>
    %c0_18 = arith.constant 0 : index
    %c0_19 = arith.constant 0 : index
    %25 = vector.load %arg8[%c0_18, %c0_19] : memref<512x64xf32, #tpu.memory_space<vmem>>, vector<512x64xf32>
    tpu.vector_store %arg8[%c0_18, %c0_19], %24 {strides = array<i32>} : memref<512x64xf32, #tpu.memory_space<vmem>>, vector<512x64xf32>,
    return
  }
  func.func @transform_0(%arg0: i32) -> (i32, i32) {
    %c0_i32 = arith.constant 0 : i32
    %c0_i32_0 = arith.constant 0 : i32
    return %arg0, %c0_i32 : i32, i32
  }
  func.func @transform_1(%arg0: i32) -> (i32, i32) {
    %c0_i32 = arith.constant 0 : i32
    %c0_i32_0 = arith.constant 0 : i32
    %c0_i32_1 = arith.constant 0 : i32
    return %c0_i32, %c0_i32_0 : i32, i32
  }
  func.func @transform_2(%arg0: i32) -> (i32, i32) {
    %c0_i32 = arith.constant 0 : i32
    %c0_i32_0 = arith.constant 0 : i32
    %c0_i32_1 = arith.constant 0 : i32
    return %c0_i32, %c0_i32_0 : i32, i32
  }
  func.func @transform_3(%arg0: i32) -> (i32, i32) {
    %c0_i32 = arith.constant 0 : i32
    %c0_i32_0 = arith.constant 0 : i32
    %c0_i32_1 = arith.constant 0 : i32
    return %c0_i32, %c0_i32_0 : i32, i32
  }
  func.func @transform_4(%arg0: i32) -> (i32, i32) {
    %c0_i32 = arith.constant 0 : i32
    %c0_i32_0 = arith.constant 0 : i32
    %c0_i32_1 = arith.constant 0 : i32
    return %c0_i32, %c0_i32_0 : i32, i32
  }
  func.func @transform_5(%arg0: i32) -> (i32, i32) {
    %c0_i32 = arith.constant 0 : i32
    %c0_i32_0 = arith.constant 0 : i32
    %c0_i32_1 = arith.constant 0 : i32
    return %c0_i32, %c0_i32_0 : i32, i32
  }
  func.func @transform_6(%arg0: i32) -> (i32, i32) {
    %c0_i32 = arith.constant 0 : i32
    %c0_i32_0 = arith.constant 0 : i32
    %c0_i32_1 = arith.constant 0 : i32
    return %c0_i32, %c0_i32_0 : i32, i32
  }
  func.func @transform_7(%arg0: i32) -> (i32, i32) {
    %c0_i32 = arith.constant 0 : i32
    %c0_i32_0 = arith.constant 0 : i32
    return %arg0, %c0_i32 : i32, i32
  }
}

</mosaic_0001>

<bundles_post_ra>
// kernel: tpu_custom_call.1
= control target key start
LH: loop header
LB: loop body
LE: loop exit
PB: predicated region body
PF: predicated region fallthrough
CT: control target
= control target key end

     0   :  { %s2452_s24 = smov 0   ;;  %s3020_s0 = inlined_call_operand.vmem [shape: f32[8192,6], index: 0, kind: input, shape index: {}]   ;;  %s3021_s1 = inlined_call_operand.vmem [shape: bf16[6,32], index: 1, kind: input, shape index: {}]   ;;  %s3022_s2 = inlined_call_operand.vmem [shape: bf16[32,32], index: 2, kind: input, shape index: {}]   ;;  %s3023_s3 = inlined_call_operand.vmem [shape: bf16[32,64], index: 3, kind: input, shape index: {}]   ;;  %s3024_s4 = inlined_call_operand.vmem [shape: f32[1,32], index: 4, kind: input, shape index: {}]   ;;  %s3025_s5 = inlined_call_operand.vmem [shape: f32[1,32], index: 5, kind: input, shape index: {}]   ;;  %s3026_s6 = inlined_call_operand.vmem [shape: f32[1,64], index: 6, kind: input, shape index: {}]   ;;  %s3027_s7 = inlined_call_operand.vmem [shape: f32[8192,64], index: 7, kind: output, shape index: {}]  }
   0x1 LB: > { %s1971_s25 = sadd.s32 4294967295, %s2410_s24   ;;  %p1975_p0 = scmp.ge.s32.totalorder %s2410_s24, 1  ;;  %s2410_s24 = sphi %s2452_s24, %s17_s24  }
   0x2   : > { %p238_p1 = scmp.lt.s32.totalorder %s2410_s24, 17 }
   0x4   : > { %p239_p2 = pnand %p1975_p0, %p238_p1 }
   0x5   : > { %v379_v0 = vld [vmem:[%s3021_s1] sm:$0x7] (!%p239_p2)  ;;  %vm484_vm0 = vcmask (!%p239_p2), 1042432   ;;  %s1976_s28 = sshll.u32 (!%p239_p2), %s1971_s25, 6  ;;  %vm387_vm1 = vcmask (!%p239_p2), 48128   ;;  %v2401_v29 = vld [vmem:[%s3022_s2 + $0x8] sm:$0xff] (!%p239_p2)  }
   0x6   : > { %242 = sbr.rel (%p239_p2) target bundleno = 804 (0x324), region = 48  ;;  %v2400_v1 = vld [vmem:[%s3022_s2] sm:$0xff] (!%p239_p2)   ;;  %2390 = vmatprep.subr.msk.bf16.mxu0 (!%p239_p2), %vm484_vm0, %v379_v0  ;;  %v486_v2 = vsel (!%p239_p2), %vm484_vm0, %v379_v0, 0  ;;  %p271_p3 = scmp.lt.s32.totalorder (!%p239_p2), %s1976_s28, 1023  ;;  %2391 = vmatprep.subr.msk.bf16.mxu1 (!%p239_p2), %vm484_vm0, %v379_v0  ;;  %vm896_vm2 = vcmask (!%p239_p2), 261120   ;;  %vm1850_vm3 = vcmask (!%p239_p2), 523264  }
   0x7   : > { %2187 = vmatpush3.bf16.msra.mxu0 (!%p239_p2), %v486_v2  ;;  %2389 = vmatpush3.bf16.msra.mxu1 (!%p239_p2), %v486_v2 }
   0x8   : > { %2252 = vmatprep.subr.bf16.mxu1 (!%p239_p2), %v2400_v1 }
   0xd   : > { %s3029_s28 = smov (!%p271_p3, %s1976_s28), 1023 }
   0xe   : > { %s1977_s8 = sshll.u32 %s3029_s28, 3 }
   0xf   : > { %s2474_s11 = scalar_lea.vmem %s3020_s0, %s1977_s8  ;;  %s2824_s27 = scalar_lea.vmem %s3027_s7, %s1977_s8 }
  0x10   : > { %v283_v3 = vld [vmem:[%s2474_s11] sm:$0xff]  ;;  %v284_v4 = vld [vmem:[%s2474_s11 + $0x8] sm:$0xff]  ;;  %v285_v5 = vld [vmem:[%s2474_s11 + $0x10] sm:$0xff] }
  0x11   : > { %v347_v6 = vpack.c.bf16 %v284_v4, %v283_v3  ;;  %v286_v7 = vld [vmem:[%s2474_s11 + $0x18] sm:$0xff]  ;;  %v287_v8 = vld [vmem:[%s2474_s11 + $0x20] sm:$0xff]  ;;  %v288_v9 = vld [vmem:[%s2474_s11 + $0x28] sm:$0xff] }
  0x12   : > { %v348_v10 = vpack.c.bf16 %v286_v7, %v285_v5  ;;  %v349_v11 = vpack.c.bf16 %v288_v9, %v287_v8  ;;  %v289_v12 = vld [vmem:[%s2474_s11 + $0x30] sm:$0xff]  ;;  %v290_v13 = vld [vmem:[%s2474_s11 + $0x38] sm:$0xff]  ;;  %v291_v14 = vld [vmem:[%s2474_s11 + $0x40] sm:$0xff] }
  0x13   : > { %2188 = vmatprep.mubr.msk.bf16.mxu0 %vm387_vm1, %v347_v6  ;;  %v292_v15 = vld [vmem:[%s2474_s11 + $0x48] sm:$0xff]  ;;  %v350_v16 = vpack.c.bf16 %v290_v13, %v289_v12  ;;  %v315_v18 = vld [vmem:[%s2474_s11 + $0x100] sm:$0xff]  ;;  %v317_v20 = vld [vmem:[%s2474_s11 + $0x110] sm:$0xff] }
  0x14   : > { %2189 = vmatmul.mubr.msk.bf16.vlgmr.msra.gmra.mrb[0].mxu0 %vm387_vm1, %v348_v10  ;;  %v351_v17 = vpack.c.bf16 %v292_v15, %v291_v14  ;;  %v316_v19 = vld [vmem:[%s2474_s11 + $0x108] sm:$0xff]  ;;  %v318_v21 = vld [vmem:[%s2474_s11 + $0x118] sm:$0xff]  ;;  %v319_v24 = vld [vmem:[%s2474_s11 + $0x120] sm:$0xff] }
  0x15   : > { %2192 = vmatprep.mubr.msk.bf16.mxu0 %vm387_vm1, %v349_v11  ;;  %v363_v22 = vpack.c.bf16 %v316_v19, %v315_v18  ;;  %v364_v23 = vpack.c.bf16 %v318_v21, %v317_v20  ;;  %v320_v25 = vld [vmem:[%s2474_s11 + $0x128] sm:$0xff]  ;;  %v293_v26 = vld [vmem:[%s2474_s11 + $0x50] sm:$0xff]  ;;  %v294_v27 = vld [vmem:[%s2474_s11 + $0x58] sm:$0xff] }
  0x16   : > { %v365_v28 = vpack.c.bf16 %v320_v25, %v319_v24  ;;  %v295_v30 = vld [vmem:[%s2474_s11 + $0x60] sm:$0xff]  ;;  %v296_v31 = vld [vmem:[%s2474_s11 + $0x68] sm:$0xff]  ;;  %v352_v32 = vpack.c.bf16 %v294_v27, %v293_v26  ;;  %v321_v33 = vld [vmem:[%s2474_s11 + $0x130] sm:$0xff] }
  0x17   : > { %2220 = vmatprep.mubr.msk.bf16.mxu1 %vm387_vm1, %v363_v22  ;;  %v322_v34 = vld [vmem:[%s2474_s11 + $0x138] sm:$0xff]  ;;  %v353_v35 = vpack.c.bf16 %v296_v31, %v295_v30  ;;  %v323_v36 = vld [vmem:[%s2474_s11 + $0x140] sm:$0xff]  ;;  %v324_v37 = vld [vmem:[%s2474_s11 + $0x148] sm:$0xff] }
  0x18   : > { %2221 = vmatmul.mubr.msk.bf16.vlgmr.msra.gmra.mrb[0].mxu1 %vm387_vm1, %v364_v23  ;;  %v366_v38 = vpack.c.bf16 %v322_v34, %v321_v33  ;;  %v367_v39 = vpack.c.bf16 %v324_v37, %v323_v36  ;;  %v297_v40 = vld [vmem:[%s2474_s11 + $0x70] sm:$0xff]  ;;  %v298_v41 = vld [vmem:[%s2474_s11 + $0x78] sm:$0xff]  ;;  %v299_v42 = vld [vmem:[%s2474_s11 + $0x80] sm:$0xff] }
  0x19   : > { %2224 = vmatprep.mubr.msk.bf16.mxu1 %vm387_vm1, %v365_v28  ;;  %2253 = vmatpush3.bf16.msra.mxu1 %v2400_v1  ;;  %v300_v43 = vld [vmem:[%s2474_s11 + $0x88] sm:$0xff]  ;;  %v354_v44 = vpack.c.bf16 %v298_v41, %v297_v40  ;;  %v325_v45 = vld [vmem:[%s2474_s11 + $0x150] sm:$0xff]  ;;  %v326_v46 = vld [vmem:[%s2474_s11 + $0x158] sm:$0xff] }
  0x1a   : > { %2254 = vmatprep.subr.bf16.mxu1 %v2401_v29  ;;  %v355_v47 = vpack.c.bf16 %v300_v43, %v299_v42  ;;  %v327_v48 = vld [vmem:[%s2474_s11 + $0x160] sm:$0xff]  ;;  %v328_v49 = vld [vmem:[%s2474_s11 + $0x168] sm:$0xff]  ;;  %v368_v50 = vpack.c.bf16 %v326_v46, %v325_v45  ;;  %v301_v52 = vld [vmem:[%s2474_s11 + $0x90] sm:$0xff] }
  0x1b   : > { %v369_v51 = vpack.c.bf16 %v328_v49, %v327_v48  ;;  %v302_v53 = vld [vmem:[%s2474_s11 + $0x98] sm:$0xff]  ;;  %v303_v54 = vld [vmem:[%s2474_s11 + $0xa0] sm:$0xff]  ;;  %v304_v55 = vld [vmem:[%s2474_s11 + $0xa8] sm:$0xff] }
  0x1c   : > { %2193 = vmatmul.mubr.msk.bf16.gmra.mrb[4].mxu0 %vm387_vm1, %v350_v16  ;;  %v356_v56 = vpack.c.bf16 %v302_v53, %v301_v52  ;;  %v329_v57 = vld [vmem:[%s2474_s11 + $0x170] sm:$0xff]  ;;  %v330_v58 = vld [vmem:[%s2474_s11 + $0x178] sm:$0xff]  ;;  %v357_v59 = vpack.c.bf16 %v304_v55, %v303_v54  ;;  %v331_v60 = vld [vmem:[%s2474_s11 + $0x180] sm:$0xff] }
  0x1d   : > { %2196 = vmatprep.mubr.msk.bf16.mxu0 %vm387_vm1, %v351_v17  ;;  %2255 = vmatpush3.bf16.msra.mxu1 %v2401_v29  ;;  %v332_v61 = vld [vmem:[%s2474_s11 + $0x188] sm:$0xff]  ;;  %v370_v62 = vpack.c.bf16 %v330_v58, %v329_v57  ;;  %v305_v0 = vld [vmem:[%s2474_s11 + $0xb0] sm:$0xff]  ;;  %v306_v1 = vld [vmem:[%s2474_s11 + $0xb8] sm:$0xff] }
  0x1e   : > { %v371_v63 = vpack.c.bf16 %v332_v61, %v331_v60  ;;  %v307_v2 = vld [vmem:[%s2474_s11 + $0xc0] sm:$0xff]  ;;  %v308_v3 = vld [vmem:[%s2474_s11 + $0xc8] sm:$0xff]  ;;  %v358_v4 = vpack.c.bf16 %v306_v1, %v305_v0  ;;  %v333_v5 = vld [vmem:[%s2474_s11 + $0x190] sm:$0xff] }
  0x1f   : > { %v334_v6 = vld [vmem:[%s2474_s11 + $0x198] sm:$0xff]  ;;  %v359_v7 = vpack.c.bf16 %v308_v3, %v307_v2  ;;  %v335_v8 = vld [vmem:[%s2474_s11 + $0x1a0] sm:$0xff]  ;;  %v336_v9 = vld [vmem:[%s2474_s11 + $0x1a8] sm:$0xff] }
  0x20   : > { %2225 = vmatmul.mubr.msk.bf16.gmra.mrb[4].mxu1 %vm387_vm1, %v366_v38  ;;  %v372_v10 = vpack.c.bf16 %v334_v6, %v333_v5  ;;  %v373_v11 = vpack.c.bf16 %v336_v9, %v335_v8  ;;  %v309_v12 = vld [vmem:[%s2474_s11 + $0xd0] sm:$0xff]  ;;  %v310_v13 = vld [vmem:[%s2474_s11 + $0xd8] sm:$0xff]  ;;  %v311_v14 = vld [vmem:[%s2474_s11 + $0xe0] sm:$0xff] }
  0x21   : > { %2228 = vmatprep.mubr.msk.bf16.mxu1 %vm387_vm1, %v367_v39  ;;  %v312_v15 = vld [vmem:[%s2474_s11 + $0xe8] sm:$0xff]  ;;  %v360_v16 = vpack.c.bf16 %v310_v13, %v309_v12  ;;  %v337_v17 = vld [vmem:[%s2474_s11 + $0x1b0] sm:$0xff]  ;;  %v338_v18 = vld [vmem:[%s2474_s11 + $0x1b8] sm:$0xff] }
  0x22   : > { %v361_v19 = vpack.c.bf16 %v312_v15, %v311_v14  ;;  %v339_v20 = vld [vmem:[%s2474_s11 + $0x1c0] sm:$0xff]  ;;  %v340_v21 = vld [vmem:[%s2474_s11 + $0x1c8] sm:$0xff]  ;;  %v374_v22 = vpack.c.bf16 %v338_v18, %v337_v17  ;;  %v313_v24 = vld [vmem:[%s2474_s11 + $0xf0] sm:$0xff] }
  0x23   : > { %v375_v23 = vpack.c.bf16 %v340_v21, %v339_v20  ;;  %v314_v25 = vld [vmem:[%s2474_s11 + $0xf8] sm:$0xff]  ;;  %v341_v27 = vld [vmem:[%s2474_s11 + $0x1d0] sm:$0xff]  ;;  %v343_v29 = vld [vmem:[%s2474_s11 + $0x1e0] sm:$0xff] }
  0x24   : > { %2197 = vmatmul.mubr.msk.bf16.gmra.mrb[8].mxu0 %vm387_vm1, %v352_v32  ;;  %v362_v26 = vpack.c.bf16 %v314_v25, %v313_v24  ;;  %v342_v28 = vld [vmem:[%s2474_s11 + $0x1d8] sm:$0xff]  ;;  %v344_v30 = vld [vmem:[%s2474_s11 + $0x1e8] sm:$0xff]  ;;  %v345_v33 = vld [vmem:[%s2474_s11 + $0x1f0] sm:$0xff] }
  0x25   : > { %2200 = vmatprep.mubr.msk.bf16.mxu0 %vm387_vm1, %v353_v35  ;;  %v376_v31 = vpack.c.bf16 %v342_v28, %v341_v27  ;;  %v377_v32 = vpack.c.bf16 %v344_v30, %v343_v29  ;;  %v346_v34 = vld [vmem:[%s2474_s11 + $0x1f8] sm:$0xff]  ;;  %v2578_v36 = vld [vmem:[%s3024_s4] ss:$0 sm:$0xff]  ;;  %v2403_v45 = vld [vmem:[%s3023_s3 + $0x8] sm:$0xff]  }
  0x26   : > { %v378_v35 = vpack.c.bf16 %v346_v34, %v345_v33 }
  0x28   : > { %2229 = vmatmul.mubr.msk.bf16.gmra.mrb[8].mxu1 %vm387_vm1, %v368_v50 }
  0x29   : > { %2232 = vmatprep.mubr.msk.bf16.mxu1 %vm387_vm1, %v369_v51 }
  0x2c   : > { %2201 = vmatmul.mubr.msk.bf16.gmra.mrb[12].mxu0 %vm387_vm1, %v354_v44  ;;  %v2402_v44 = vld [vmem:[%s3023_s3] sm:$0xff]  }
  0x2d   : > { %2204 = vmatprep.mubr.msk.bf16.mxu0 %vm387_vm1, %v355_v47  ;;  %2320 = vmatprep.subr.bf16.mxu0 %v2402_v44 }
  0x2e   : > { %2321 = vmatpush3.bf16.msra.mxu0 %v2402_v44 }
  0x2f   : > { %2322 = vmatprep.subr.bf16.mxu0 %v2403_v45 }
  0x30   : > { %2233 = vmatmul.mubr.msk.bf16.gmra.mrb[12].mxu1 %vm387_vm1, %v370_v62 }
  0x31   : > { %2236 = vmatprep.mubr.msk.bf16.mxu1 %vm387_vm1, %v371_v63 }
  0x32   : > { %2323 = vmatpush3.bf16.msra.mxu0 %v2403_v45 }
  0x34   : > { %2205 = vmatmul.mubr.msk.bf16.gmra.mrb[16].mxu0 %vm387_vm1, %v356_v56 }
  0x35   : > { %2208 = vmatprep.mubr.msk.bf16.mxu0 %vm387_vm1, %v357_v59 }
  0x38   : > { %2237 = vmatmul.mubr.msk.bf16.gmra.mrb[16].mxu1 %vm387_vm1, %v372_v10 }
  0x39   : > { %2240 = vmatprep.mubr.msk.bf16.mxu1 %vm387_vm1, %v373_v11 }
  0x3c   : > { %2209 = vmatmul.mubr.msk.bf16.gmra.mrb[20].mxu0 %vm387_vm1, %v358_v4 }
  0x3d   : > { %2212 = vmatprep.mubr.msk.bf16.mxu0 %vm387_vm1, %v359_v7 }
  0x40   : > { %2241 = vmatmul.mubr.msk.bf16.gmra.mrb[20].mxu1 %vm387_vm1, %v374_v22 }
  0x41   : > { %2244 = vmatprep.mubr.msk.bf16.mxu1 %vm387_vm1, %v375_v23 }
  0x44   : > { %2213 = vmatmul.mubr.msk.bf16.gmra.mrb[24].mxu0 %vm387_vm1, %v360_v16 }
  0x45   : > { %2216 = vmatprep.mubr.msk.bf16.mxu0 %vm387_vm1, %v361_v19 }
  0x48   : > { %2245 = vmatmul.mubr.msk.bf16.gmra.mrb[24].mxu1 %vm387_vm1, %v376_v31 }
  0x49   : > { %2248 = vmatprep.mubr.msk.bf16.mxu1 %vm387_vm1, %v377_v32 }
  0x4c   : > { %2217 = vmatmul.mubr.msk.bf16.gmra.mrb[28].mxu0 %vm387_vm1, %v362_v26 }
  0x50   : > { %2249 = vmatmul.mubr.msk.bf16.gmra.mrb[28].mxu1 %vm387_vm1, %v378_v35 }
  0xe7   : > { %v2190_v37 = vpop.f32.mrb[0].mxu0 }
  0xe8   : > { %v531_v38 = vadd.f32 %v2190_v37, %v2578_v36  ;;  %v522_v39 = vpop.f32.mrb[1].mxu0 }
  0xe9   : > { %v523_v40 = vadd.f32 %v2578_v36, %v522_v39  ;;  %v2191_v41 = vpop.f32.mrb[2].mxu0 }
  0xea   : > { %v534_v42 = vadd.f32 %v2191_v41, %v2578_v36  ;;  %v525_v43 = vpop.f32.mrb[3].mxu0  ;;  %v779_v47 = vmax.f32 %v531_v38, 0.0 }
  0xeb   : > { %v526_v46 = vadd.f32 %v2578_v36, %v525_v43  ;;  %v777_v49 = vmax.f32 %v523_v40, 0.0  ;;  %v2222_v60 = vpop.f32.mrb[0].mxu1 }
  0xec   : > { %v780_v48 = vmax.f32 %v534_v42, 0.0  ;;  %v659_v62 = vadd.f32 %v2222_v60, %v2578_v36  ;;  %v650_v63 = vpop.f32.mrb[1].mxu1 }
  0xed   : > { %v778_v50 = vmax.f32 %v526_v46, 0.0  ;;  %v651_v2 = vadd.f32 %v2578_v36, %v650_v63  ;;  %v2223_v3 = vpop.f32.mrb[2].mxu1 }
  0xee   : > { %v842_v51 = vpack.c.bf16 %v780_v48, %v779_v47  ;;  %v811_v6 = vmax.f32 %v659_v62, 0.0  ;;  %v662_v7 = vadd.f32 %v2223_v3, %v2578_v36  ;;  %v653_v8 = vpop.f32.mrb[3].mxu1 }
  0xef   : > { %v841_v52 = vpack.c.bf16 %v778_v50, %v777_v49  ;;  %v2194_v53 = vpop.f32.mrb[4].mxu0  ;;  %v809_v10 = vmax.f32 %v651_v2, 0.0  ;;  %v654_v11 = vadd.f32 %v2578_v36, %v653_v8 }
  0xf0   : > { %v547_v54 = vadd.f32 %v2194_v53, %v2578_v36  ;;  %v538_v55 = vpop.f32.mrb[5].mxu0  ;;  %v812_v14 = vmax.f32 %v662_v7, 0.0 }
  0xf1   : > { %v539_v56 = vadd.f32 %v2578_v36, %v538_v55  ;;  %v2195_v57 = vpop.f32.mrb[6].mxu0  ;;  %2256 = vmatprep.mubr.msk.bf16.mxu1 %vm896_vm2, %v841_v52  ;;  %v810_v17 = vmax.f32 %v654_v11, 0.0 }
  0xf2   : > { %v550_v58 = vadd.f32 %v2195_v57, %v2578_v36  ;;  %v541_v59 = vpop.f32.mrb[7].mxu0  ;;  %2257 = vmatmul.mubr.msk.bf16.vlgmr.msra.gmra.mrb[32].mxu1 %vm896_vm2, %v842_v51  ;;  %v783_v0 = vmax.f32 %v547_v54, 0.0  ;;  %v2603_v20 = vpack.c.bf16 %v812_v14, %v811_v6 }
  0xf3   : > { %v542_v61 = vadd.f32 %v2578_v36, %v541_v59  ;;  %v781_v4 = vmax.f32 %v539_v56, 0.0  ;;  %v2607_v23 = vpack.c.bf16 %v810_v17, %v809_v10  ;;  %v2226_v24 = vpop.f32.mrb[4].mxu1 }
  0xf4   : > { %v784_v1 = vmax.f32 %v550_v58, 0.0  ;;  %v675_v26 = vadd.f32 %v2226_v24, %v2578_v36  ;;  %v666_v27 = vpop.f32.mrb[5].mxu1 }
  0xf5   : > { %v782_v5 = vmax.f32 %v542_v61, 0.0  ;;  %v667_v30 = vadd.f32 %v2578_v36, %v666_v27  ;;  %v2227_v31 = vpop.f32.mrb[6].mxu1 }
  0xf6   : > { %v844_v9 = vpack.c.bf16 %v784_v1, %v783_v0  ;;  %v815_v34 = vmax.f32 %v675_v26, 0.0  ;;  %v678_v35 = vadd.f32 %v2227_v31, %v2578_v36  ;;  %v669_v37 = vpop.f32.mrb[7].mxu1 }
  0xf7   : > { %v843_v12 = vpack.c.bf16 %v782_v5, %v781_v4  ;;  %v2198_v13 = vpop.f32.mrb[8].mxu0  ;;  %v813_v39 = vmax.f32 %v667_v30, 0.0  ;;  %v670_v40 = vadd.f32 %v2578_v36, %v669_v37 }
  0xf8   : > { %v563_v15 = vadd.f32 %v2198_v13, %v2578_v36  ;;  %v554_v16 = vpop.f32.mrb[9].mxu0  ;;  %v816_v43 = vmax.f32 %v678_v35, 0.0 }
  0xf9   : > { %v555_v18 = vadd.f32 %v2578_v36, %v554_v16  ;;  %v2199_v19 = vpop.f32.mrb[10].mxu0  ;;  %2260 = vmatprep.mubr.msk.bf16.mxu1 %vm896_vm2, %v843_v12  ;;  %v814_v46 = vmax.f32 %v670_v40, 0.0 }
  0xfa   : > { %v566_v21 = vadd.f32 %v2199_v19, %v2578_v36  ;;  %v557_v22 = vpop.f32.mrb[11].mxu0  ;;  %2261 = vmatmul.mubr.msk.bf16.gmra.mrb[36].mxu1 %vm896_vm2, %v844_v9  ;;  %v787_v28 = vmax.f32 %v563_v15, 0.0  ;;  %v2617_v49 = vpack.c.bf16 %v816_v43, %v815_v34 }
  0xfb   : > { %v558_v25 = vadd.f32 %v2578_v36, %v557_v22  ;;  %v785_v32 = vmax.f32 %v555_v18, 0.0  ;;  %v2621_v52 = vpack.c.bf16 %v814_v46, %v813_v39  ;;  %v2230_v53 = vpop.f32.mrb[8].mxu1 }
  0xfc   : > { %v788_v29 = vmax.f32 %v566_v21, 0.0  ;;  %v691_v55 = vadd.f32 %v2230_v53, %v2578_v36  ;;  %v682_v56 = vpop.f32.mrb[9].mxu1 }
  0xfd   : > { %v786_v33 = vmax.f32 %v558_v25, 0.0  ;;  %v683_v59 = vadd.f32 %v2578_v36, %v682_v56  ;;  %v2231_v60 = vpop.f32.mrb[10].mxu1 }
  0xfe   : > { %v846_v38 = vpack.c.bf16 %v788_v29, %v787_v28  ;;  %v819_v63 = vmax.f32 %v691_v55, 0.0  ;;  %v694_v0 = vadd.f32 %v2231_v60, %v2578_v36  ;;  %v685_v1 = vpop.f32.mrb[11].mxu1 }
  0xff   : > { %v845_v41 = vpack.c.bf16 %v786_v33, %v785_v32  ;;  %v2202_v42 = vpop.f32.mrb[12].mxu0  ;;  %v817_v3 = vmax.f32 %v683_v59, 0.0  ;;  %v686_v4 = vadd.f32 %v2578_v36, %v685_v1 }
 0x100   : > { %v579_v44 = vadd.f32 %v2202_v42, %v2578_v36  ;;  %v570_v45 = vpop.f32.mrb[13].mxu0  ;;  %v820_v7 = vmax.f32 %v694_v0, 0.0 }
 0x101   : > { %v571_v47 = vadd.f32 %v2578_v36, %v570_v45  ;;  %v2203_v48 = vpop.f32.mrb[14].mxu0  ;;  %2264 = vmatprep.mubr.msk.bf16.mxu1 %vm896_vm2, %v845_v41  ;;  %v818_v10 = vmax.f32 %v686_v4, 0.0 }
 0x102   : > { %v582_v50 = vadd.f32 %v2203_v48, %v2578_v36  ;;  %v573_v51 = vpop.f32.mrb[15].mxu0  ;;  %2265 = vmatmul.mubr.msk.bf16.gmra.mrb[40].mxu1 %vm896_vm2, %v846_v38  ;;  %v791_v57 = vmax.f32 %v579_v44, 0.0  ;;  %v2631_v13 = vpack.c.bf16 %v820_v7, %v819_v63 }
 0x103   : > { %v574_v54 = vadd.f32 %v2578_v36, %v573_v51  ;;  %v789_v61 = vmax.f32 %v571_v47, 0.0  ;;  %v2635_v16 = vpack.c.bf16 %v818_v10, %v817_v3  ;;  %v2234_v17 = vpop.f32.mrb[12].mxu1 }
 0x104   : > { %v792_v58 = vmax.f32 %v582_v50, 0.0  ;;  %v707_v19 = vadd.f32 %v2234_v17, %v2578_v36  ;;  %v698_v21 = vpop.f32.mrb[13].mxu1 }
 0x105   : > { %v790_v62 = vmax.f32 %v574_v54, 0.0  ;;  %v699_v25 = vadd.f32 %v2578_v36, %v698_v21  ;;  %v2235_v26 = vpop.f32.mrb[14].mxu1 }
 0x106   : > { %v848_v2 = vpack.c.bf16 %v792_v58, %v791_v57  ;;  %v823_v29 = vmax.f32 %v707_v19, 0.0  ;;  %v710_v30 = vadd.f32 %v2235_v26, %v2578_v36  ;;  %v701_v31 = vpop.f32.mrb[15].mxu1 }
 0x107   : > { %v847_v5 = vpack.c.bf16 %v790_v62, %v789_v61  ;;  %v2206_v6 = vpop.f32.mrb[16].mxu0  ;;  %v821_v33 = vmax.f32 %v699_v25, 0.0  ;;  %v702_v34 = vadd.f32 %v2578_v36, %v701_v31 }
 0x108   : > { %v595_v8 = vadd.f32 %v2206_v6, %v2578_v36  ;;  %v586_v9 = vpop.f32.mrb[17].mxu0  ;;  %v824_v38 = vmax.f32 %v710_v30, 0.0 }
 0x109   : > { %v587_v11 = vadd.f32 %v2578_v36, %v586_v9  ;;  %v2207_v12 = vpop.f32.mrb[18].mxu0  ;;  %2268 = vmatprep.mubr.msk.bf16.mxu1 %vm896_vm2, %v847_v5  ;;  %v822_v41 = vmax.f32 %v702_v34, 0.0 }
 0x10a   : > { %v598_v14 = vadd.f32 %v2207_v12, %v2578_v36  ;;  %v589_v15 = vpop.f32.mrb[19].mxu0  ;;  %2269 = vmatmul.mubr.msk.bf16.gmra.mrb[44].mxu1 %vm896_vm2, %v848_v2  ;;  %v795_v22 = vmax.f32 %v595_v8, 0.0  ;;  %v2645_v44 = vpack.c.bf16 %v824_v38, %v823_v29 }
 0x10b   : > { %v590_v18 = vadd.f32 %v2578_v36, %v589_v15  ;;  %v793_v27 = vmax.f32 %v587_v11, 0.0  ;;  %v2649_v47 = vpack.c.bf16 %v822_v41, %v821_v33  ;;  %v2238_v48 = vpop.f32.mrb[16].mxu1 }
 0x10c   : > { %v796_v24 = vmax.f32 %v598_v14, 0.0  ;;  %v723_v51 = vadd.f32 %v2238_v48, %v2578_v36  ;;  %v714_v53 = vpop.f32.mrb[17].mxu1 }
 0x10d   : > { %v794_v28 = vmax.f32 %v590_v18, 0.0  ;;  %v715_v56 = vadd.f32 %v2578_v36, %v714_v53  ;;  %v2239_v57 = vpop.f32.mrb[18].mxu1 }
 0x10e   : > { %v850_v32 = vpack.c.bf16 %v796_v24, %v795_v22  ;;  %v827_v60 = vmax.f32 %v723_v51, 0.0  ;;  %v726_v61 = vadd.f32 %v2239_v57, %v2578_v36  ;;  %v717_v62 = vpop.f32.mrb[19].mxu1 }
 0x10f   : > { %v849_v35 = vpack.c.bf16 %v794_v28, %v793_v27  ;;  %v2210_v37 = vpop.f32.mrb[20].mxu0  ;;  %v825_v0 = vmax.f32 %v715_v56, 0.0  ;;  %v718_v1 = vadd.f32 %v2578_v36, %v717_v62 }
 0x110   : > { %v611_v39 = vadd.f32 %v2210_v37, %v2578_v36  ;;  %v602_v40 = vpop.f32.mrb[21].mxu0  ;;  %v828_v4 = vmax.f32 %v726_v61, 0.0 }
 0x111   : > { %v603_v42 = vadd.f32 %v2578_v36, %v602_v40  ;;  %v2211_v43 = vpop.f32.mrb[22].mxu0  ;;  %2272 = vmatprep.mubr.msk.bf16.mxu1 %vm896_vm2, %v849_v35  ;;  %v826_v7 = vmax.f32 %v718_v1, 0.0 }
 0x112   : > { %v614_v45 = vadd.f32 %v2211_v43, %v2578_v36  ;;  %v605_v46 = vpop.f32.mrb[23].mxu0  ;;  %2273 = vmatmul.mubr.msk.bf16.gmra.mrb[48].mxu1 %vm896_vm2, %v850_v32  ;;  %v799_v54 = vmax.f32 %v611_v39, 0.0  ;;  %v2659_v10 = vpack.c.bf16 %v828_v4, %v827_v60 }
 0x113   : > { %v606_v50 = vadd.f32 %v2578_v36, %v605_v46  ;;  %v797_v58 = vmax.f32 %v603_v42, 0.0  ;;  %v2663_v14 = vpack.c.bf16 %v826_v7, %v825_v0  ;;  %v2242_v15 = vpop.f32.mrb[20].mxu1 }
 0x114   : > { %v800_v55 = vmax.f32 %v614_v45, 0.0  ;;  %v739_v18 = vadd.f32 %v2242_v15, %v2578_v36  ;;  %v730_v19 = vpop.f32.mrb[21].mxu1 }
 0x115   : > { %v798_v59 = vmax.f32 %v606_v50, 0.0  ;;  %v731_v24 = vadd.f32 %v2578_v36, %v730_v19  ;;  %v2243_v25 = vpop.f32.mrb[22].mxu1 }
 0x116   : > { %v852_v63 = vpack.c.bf16 %v800_v55, %v799_v54  ;;  %v831_v28 = vmax.f32 %v739_v18, 0.0  ;;  %v742_v29 = vadd.f32 %v2243_v25, %v2578_v36  ;;  %v733_v30 = vpop.f32.mrb[23].mxu1 }
 0x117   : > { %v851_v2 = vpack.c.bf16 %v798_v59, %v797_v58  ;;  %v2214_v3 = vpop.f32.mrb[24].mxu0  ;;  %v829_v32 = vmax.f32 %v731_v24, 0.0  ;;  %v734_v33 = vadd.f32 %v2578_v36, %v733_v30 }
 0x118   : > { %v627_v5 = vadd.f32 %v2214_v3, %v2578_v36  ;;  %v618_v6 = vpop.f32.mrb[25].mxu0  ;;  %v832_v37 = vmax.f32 %v742_v29, 0.0 }
 0x119   : > { %v619_v8 = vadd.f32 %v2578_v36, %v618_v6  ;;  %v2215_v9 = vpop.f32.mrb[26].mxu0  ;;  %2276 = vmatprep.mubr.msk.bf16.mxu1 %vm896_vm2, %v851_v2  ;;  %v830_v40 = vmax.f32 %v734_v33, 0.0 }
 0x11a   : > { %v630_v11 = vadd.f32 %v2215_v9, %v2578_v36  ;;  %v621_v12 = vpop.f32.mrb[27].mxu0  ;;  %2277 = vmatmul.mubr.msk.bf16.gmra.mrb[52].mxu1 %vm896_vm2, %v852_v63  ;;  %v803_v21 = vmax.f32 %v627_v5, 0.0  ;;  %v868_v43 = vpack.c.bf16 %v832_v37, %v831_v28 }
 0x11b   : > { %v622_v17 = vadd.f32 %v2578_v36, %v621_v12  ;;  %v801_v26 = vmax.f32 %v619_v8, 0.0  ;;  %v867_v48 = vpack.c.bf16 %v830_v40, %v829_v32  ;;  %v2246_v50 = vpop.f32.mrb[24].mxu1 }
 0x11c   : > { %v804_v22 = vmax.f32 %v630_v11, 0.0  ;;  %v755_v53 = vadd.f32 %v2246_v50, %v2578_v36  ;;  %v746_v54 = vpop.f32.mrb[25].mxu1 }
 0x11d   : > { %v802_v27 = vmax.f32 %v622_v17, 0.0  ;;  %v747_v57 = vadd.f32 %v2578_v36, %v746_v54  ;;  %v2247_v58 = vpop.f32.mrb[26].mxu1 }
 0x11e   : > { %v854_v31 = vpack.c.bf16 %v804_v22, %v803_v21  ;;  %v835_v61 = vmax.f32 %v755_v53, 0.0  ;;  %v758_v62 = vadd.f32 %v2247_v58, %v2578_v36  ;;  %v749_v63 = vpop.f32.mrb[27].mxu1 }
 0x11f   : > { %v853_v34 = vpack.c.bf16 %v802_v27, %v801_v26  ;;  %v2218_v35 = vpop.f32.mrb[28].mxu0  ;;  %v833_v1 = vmax.f32 %v747_v57, 0.0  ;;  %v750_v2 = vadd.f32 %v2578_v36, %v749_v63 }
 0x120   : > { %v643_v38 = vadd.f32 %v2218_v35, %v2578_v36  ;;  %v634_v39 = vpop.f32.mrb[29].mxu0  ;;  %v836_v4 = vmax.f32 %v758_v62, 0.0 }
 0x121   : > { %v635_v41 = vadd.f32 %v2578_v36, %v634_v39  ;;  %v2219_v42 = vpop.f32.mrb[30].mxu0  ;;  %2280 = vmatprep.mubr.msk.bf16.mxu1 %vm896_vm2, %v853_v34  ;;  %v834_v5 = vmax.f32 %v750_v2, 0.0 }
 0x122   : > { %v646_v45 = vadd.f32 %v2219_v42, %v2578_v36  ;;  %v637_v46 = vpop.f32.mrb[31].mxu0  ;;  %2281 = vmatmul.mubr.msk.bf16.gmra.mrb[56].mxu1 %vm896_vm2, %v854_v31  ;;  %v807_v55 = vmax.f32 %v643_v38, 0.0  ;;  %v870_v6 = vpack.c.bf16 %v836_v4, %v835_v61 }
 0x123   : > { %v638_v51 = vadd.f32 %v2578_v36, %v637_v46  ;;  %v805_v59 = vmax.f32 %v635_v41, 0.0  ;;  %v869_v7 = vpack.c.bf16 %v834_v5, %v833_v1  ;;  %v2250_v8 = vpop.f32.mrb[28].mxu1 }
 0x124   : > { %v808_v56 = vmax.f32 %v646_v45, 0.0  ;;  %v771_v9 = vadd.f32 %v2250_v8, %v2578_v36  ;;  %v762_v11 = vpop.f32.mrb[29].mxu1 }
 0x125   : > { %v806_v60 = vmax.f32 %v638_v51, 0.0  ;;  %v763_v12 = vadd.f32 %v2578_v36, %v762_v11  ;;  %v2251_v15 = vpop.f32.mrb[30].mxu1 }
 0x126   : > { %v856_v0 = vpack.c.bf16 %v808_v56, %v807_v55  ;;  %v839_v17 = vmax.f32 %v771_v9, 0.0  ;;  %v774_v18 = vadd.f32 %v2251_v15, %v2578_v36  ;;  %v765_v19 = vpop.f32.mrb[31].mxu1 }
 0x127   : > { %v855_v3 = vpack.c.bf16 %v806_v60, %v805_v59  ;;  %v837_v21 = vmax.f32 %v763_v12, 0.0  ;;  %v766_v22 = vadd.f32 %v2578_v36, %v765_v19  ;;  %v2715_v36 = vld [vmem:[%s3025_s5] ss:$0 sm:$0xff] }
 0x128   : > { %v840_v24 = vmax.f32 %v774_v18, 0.0 }
 0x129   : > { %2284 = vmatprep.mubr.msk.bf16.mxu1 %vm896_vm2, %v855_v3  ;;  %v838_v25 = vmax.f32 %v766_v22, 0.0 }
 0x12a   : > { %2285 = vmatmul.mubr.msk.bf16.gmra.mrb[60].mxu1 %vm896_vm2, %v856_v0  ;;  %v872_v26 = vpack.c.bf16 %v840_v24, %v839_v17 }
 0x12b   : > { %2288 = vmatprep.mubr.msk.bf16.mxu1 %vm896_vm2, %v2607_v23  ;;  %v871_v23 = vpack.c.bf16 %v838_v25, %v837_v21 }
 0x132   : > { %2289 = vmatmul.mubr.msk.bf16.gmra.mrb[64].mxu1 %vm896_vm2, %v2603_v20 }
 0x133   : > { %2292 = vmatprep.mubr.msk.bf16.mxu1 %vm896_vm2, %v2621_v52 }
 0x13a   : > { %2293 = vmatmul.mubr.msk.bf16.gmra.mrb[68].mxu1 %vm896_vm2, %v2617_v49 }
 0x13b   : > { %2296 = vmatprep.mubr.msk.bf16.mxu1 %vm896_vm2, %v2635_v16 }
 0x142   : > { %2297 = vmatmul.mubr.msk.bf16.gmra.mrb[72].mxu1 %vm896_vm2, %v2631_v13 }
 0x143   : > { %2300 = vmatprep.mubr.msk.bf16.mxu1 %vm896_vm2, %v2649_v47 }
 0x14a   : > { %2301 = vmatmul.mubr.msk.bf16.gmra.mrb[76].mxu1 %vm896_vm2, %v2645_v44 }
 0x14b   : > { %2304 = vmatprep.mubr.msk.bf16.mxu1 %vm896_vm2, %v2663_v14 }
 0x152   : > { %2305 = vmatmul.mubr.msk.bf16.gmra.mrb[80].mxu1 %vm896_vm2, %v2659_v10 }
 0x153   : > { %2308 = vmatprep.mubr.msk.bf16.mxu1 %vm896_vm2, %v867_v48 }
 0x15a   : > { %2309 = vmatmul.mubr.msk.bf16.gmra.mrb[84].mxu1 %vm896_vm2, %v868_v43 }
 0x15b   : > { %2312 = vmatprep.mubr.msk.bf16.mxu1 %vm896_vm2, %v869_v7 }
 0x162   : > { %2313 = vmatmul.mubr.msk.bf16.gmra.mrb[88].mxu1 %vm896_vm2, %v870_v6 }
 0x163   : > { %2316 = vmatprep.mubr.msk.bf16.mxu1 %vm896_vm2, %v871_v23 }
 0x16a   : > { %2317 = vmatmul.mubr.msk.bf16.gmra.mrb[92].mxu1 %vm896_vm2, %v872_v26 }
 0x1c5   : > { %v2258_v20 = vpop.f32.mrb[32].mxu1 }
 0x1c6   : > { %v1036_v49 = vadd.f32 %v2258_v20, %v2715_v36  ;;  %v1027_v52 = vpop.f32.mrb[33].mxu1 }
 0x1c7   : > { %v1028_v13 = vadd.f32 %v2715_v36, %v1027_v52  ;;  %v2259_v16 = vpop.f32.mrb[34].mxu1 }
 0x1c8   : > { %v1039_v44 = vadd.f32 %v2259_v16, %v2715_v36  ;;  %v1030_v47 = vpop.f32.mrb[35].mxu1  ;;  %v1284_v14 = vmax.f32 %v1036_v49, 0.0 }
 0x1c9   : > { %v1031_v10 = vadd.f32 %v2715_v36, %v1030_v47  ;;  %v1282_v28 = vmax.f32 %v1028_v13, 0.0 }
 0x1ca   : > { %v1285_v27 = vmax.f32 %v1039_v44, 0.0 }
 0x1cb   : > { %v1283_v29 = vmax.f32 %v1031_v10, 0.0 }
 0x1cc   : > { %v1347_v30 = vpack.c.bf16 %v1285_v27, %v1284_v14 }
 0x1cd   : > { %v1346_v31 = vpack.c.bf16 %v1283_v29, %v1282_v28  ;;  %v2262_v32 = vpop.f32.mrb[36].mxu1 }
 0x1ce   : > { %v1052_v33 = vadd.f32 %v2262_v32, %v2715_v36  ;;  %v1043_v34 = vpop.f32.mrb[37].mxu1 }
 0x1cf   : > { %v1044_v35 = vadd.f32 %v2715_v36, %v1043_v34  ;;  %v2263_v37 = vpop.f32.mrb[38].mxu1  ;;  %2324 = vmatprep.mubr.msk.bf16.mxu0 %vm896_vm2, %v1346_v31 }
 0x1d0   : > { %v1055_v38 = vadd.f32 %v2263_v37, %v2715_v36  ;;  %v1046_v39 = vpop.f32.mrb[39].mxu1  ;;  %2325 = vmatmul.mubr.msk.bf16.vlgmr.msra.gmra.mrb[32].mxu0 %vm896_vm2, %v1347_v30  ;;  %v1288_v41 = vmax.f32 %v1052_v33, 0.0 }
 0x1d1   : > { %v1047_v40 = vadd.f32 %v2715_v36, %v1046_v39  ;;  %v1286_v43 = vmax.f32 %v1044_v35, 0.0 }
 0x1d2   : > { %v1289_v42 = vmax.f32 %v1055_v38, 0.0 }
 0x1d3   : > { %v1287_v45 = vmax.f32 %v1047_v40, 0.0 }
 0x1d4   : > { %v1349_v46 = vpack.c.bf16 %v1289_v42, %v1288_v41 }
 0x1d5   : > { %v1348_v48 = vpack.c.bf16 %v1287_v45, %v1286_v43  ;;  %v2266_v50 = vpop.f32.mrb[40].mxu1 }
 0x1d6   : > { %v1068_v51 = vadd.f32 %v2266_v50, %v2715_v36  ;;  %v1059_v53 = vpop.f32.mrb[41].mxu1 }
 0x1d7   : > { %v1060_v54 = vadd.f32 %v2715_v36, %v1059_v53  ;;  %v2267_v55 = vpop.f32.mrb[42].mxu1  ;;  %2328 = vmatprep.mubr.msk.bf16.mxu0 %vm896_vm2, %v1348_v48 }
 0x1d8   : > { %v1071_v56 = vadd.f32 %v2267_v55, %v2715_v36  ;;  %v1062_v57 = vpop.f32.mrb[43].mxu1  ;;  %2329 = vmatmul.mubr.msk.bf16.gmra.mrb[36].mxu0 %vm896_vm2, %v1349_v46  ;;  %v1292_v59 = vmax.f32 %v1068_v51, 0.0 }
 0x1d9   : > { %v1063_v58 = vadd.f32 %v2715_v36, %v1062_v57  ;;  %v1290_v61 = vmax.f32 %v1060_v54, 0.0 }
 0x1da   : > { %v1293_v60 = vmax.f32 %v1071_v56, 0.0 }
 0x1db   : > { %v1291_v62 = vmax.f32 %v1063_v58, 0.0 }
 0x1dc   : > { %v1351_v63 = vpack.c.bf16 %v1293_v60, %v1292_v59 }
 0x1dd   : > { %v1350_v0 = vpack.c.bf16 %v1291_v62, %v1290_v61  ;;  %v2270_v1 = vpop.f32.mrb[44].mxu1 }
 0x1de   : > { %v1084_v2 = vadd.f32 %v2270_v1, %v2715_v36  ;;  %v1075_v3 = vpop.f32.mrb[45].mxu1 }
 0x1df   : > { %v1076_v4 = vadd.f32 %v2715_v36, %v1075_v3  ;;  %v2271_v5 = vpop.f32.mrb[46].mxu1  ;;  %2332 = vmatprep.mubr.msk.bf16.mxu0 %vm896_vm2, %v1350_v0 }
 0x1e0   : > { %v1087_v6 = vadd.f32 %v2271_v5, %v2715_v36  ;;  %v1078_v7 = vpop.f32.mrb[47].mxu1  ;;  %2333 = vmatmul.mubr.msk.bf16.gmra.mrb[40].mxu0 %vm896_vm2, %v1351_v63  ;;  %v1296_v9 = vmax.f32 %v1084_v2, 0.0 }
 0x1e1   : > { %v1079_v8 = vadd.f32 %v2715_v36, %v1078_v7  ;;  %v1294_v12 = vmax.f32 %v1076_v4, 0.0 }
 0x1e2   : > { %v1297_v11 = vmax.f32 %v1087_v6, 0.0 }
 0x1e3   : > { %v1295_v15 = vmax.f32 %v1079_v8, 0.0 }
 0x1e4   : > { %v1353_v17 = vpack.c.bf16 %v1297_v11, %v1296_v9 }
 0x1e5   : > { %v1352_v18 = vpack.c.bf16 %v1295_v15, %v1294_v12  ;;  %v2274_v19 = vpop.f32.mrb[48].mxu1 }
 0x1e6   : > { %v1100_v21 = vadd.f32 %v2274_v19, %v2715_v36  ;;  %v1091_v22 = vpop.f32.mrb[49].mxu1 }
 0x1e7   : > { %v1092_v24 = vadd.f32 %v2715_v36, %v1091_v22  ;;  %v2275_v25 = vpop.f32.mrb[50].mxu1  ;;  %2336 = vmatprep.mubr.msk.bf16.mxu0 %vm896_vm2, %v1352_v18 }
 0x1e8   : > { %v1103_v26 = vadd.f32 %v2275_v25, %v2715_v36  ;;  %v1094_v23 = vpop.f32.mrb[51].mxu1  ;;  %2337 = vmatmul.mubr.msk.bf16.gmra.mrb[44].mxu0 %vm896_vm2, %v1353_v17  ;;  %v1300_v49 = vmax.f32 %v1100_v21, 0.0 }
 0x1e9   : > { %v1095_v20 = vadd.f32 %v2715_v36, %v1094_v23  ;;  %v1298_v13 = vmax.f32 %v1092_v24, 0.0 }
 0x1ea   : > { %v1301_v52 = vmax.f32 %v1103_v26, 0.0 }
 0x1eb   : > { %v1299_v16 = vmax.f32 %v1095_v20, 0.0 }
 0x1ec   : > { %v1355_v44 = vpack.c.bf16 %v1301_v52, %v1300_v49 }
 0x1ed   : > { %v1354_v47 = vpack.c.bf16 %v1299_v16, %v1298_v13  ;;  %v2278_v10 = vpop.f32.mrb[52].mxu1 }
 0x1ee   : > { %v1116_v14 = vadd.f32 %v2278_v10, %v2715_v36  ;;  %v1107_v27 = vpop.f32.mrb[53].mxu1 }
 0x1ef   : > { %v1108_v28 = vadd.f32 %v2715_v36, %v1107_v27  ;;  %v2279_v29 = vpop.f32.mrb[54].mxu1  ;;  %2340 = vmatprep.mubr.msk.bf16.mxu0 %vm896_vm2, %v1354_v47 }
 0x1f0   : > { %v1119_v30 = vadd.f32 %v2279_v29, %v2715_v36  ;;  %v1110_v31 = vpop.f32.mrb[55].mxu1  ;;  %2341 = vmatmul.mubr.msk.bf16.gmra.mrb[48].mxu0 %vm896_vm2, %v1355_v44  ;;  %v1304_v33 = vmax.f32 %v1116_v14, 0.0 }
 0x1f1   : > { %v1111_v32 = vadd.f32 %v2715_v36, %v1110_v31  ;;  %v1302_v35 = vmax.f32 %v1108_v28, 0.0 }
 0x1f2   : > { %v1305_v34 = vmax.f32 %v1119_v30, 0.0 }
 0x1f3   : > { %v1303_v37 = vmax.f32 %v1111_v32, 0.0 }
 0x1f4   : > { %v1357_v38 = vpack.c.bf16 %v1305_v34, %v1304_v33 }
 0x1f5   : > { %v1356_v39 = vpack.c.bf16 %v1303_v37, %v1302_v35  ;;  %v2282_v40 = vpop.f32.mrb[56].mxu1 }
 0x1f6   : > { %v1132_v41 = vadd.f32 %v2282_v40, %v2715_v36  ;;  %v1123_v42 = vpop.f32.mrb[57].mxu1 }
 0x1f7   : > { %v1124_v43 = vadd.f32 %v2715_v36, %v1123_v42  ;;  %v2283_v45 = vpop.f32.mrb[58].mxu1  ;;  %2344 = vmatprep.mubr.msk.bf16.mxu0 %vm896_vm2, %v1356_v39 }
 0x1f8   : > { %v1135_v46 = vadd.f32 %v2283_v45, %v2715_v36  ;;  %v1126_v48 = vpop.f32.mrb[59].mxu1  ;;  %2345 = vmatmul.mubr.msk.bf16.gmra.mrb[52].mxu0 %vm896_vm2, %v1357_v38  ;;  %v1308_v51 = vmax.f32 %v1132_v41, 0.0 }
 0x1f9   : > { %v1127_v50 = vadd.f32 %v2715_v36, %v1126_v48  ;;  %v1306_v54 = vmax.f32 %v1124_v43, 0.0 }
 0x1fa   : > { %v1309_v53 = vmax.f32 %v1135_v46, 0.0 }
 0x1fb   : > { %v1307_v55 = vmax.f32 %v1127_v50, 0.0 }
 0x1fc   : > { %v1359_v56 = vpack.c.bf16 %v1309_v53, %v1308_v51 }
 0x1fd   : > { %v1358_v57 = vpack.c.bf16 %v1307_v55, %v1306_v54  ;;  %v2286_v58 = vpop.f32.mrb[60].mxu1 }
 0x1fe   : > { %v1148_v59 = vadd.f32 %v2286_v58, %v2715_v36  ;;  %v1139_v60 = vpop.f32.mrb[61].mxu1 }
 0x1ff   : > { %v1140_v61 = vadd.f32 %v2715_v36, %v1139_v60  ;;  %v2287_v62 = vpop.f32.mrb[62].mxu1  ;;  %2348 = vmatprep.mubr.msk.bf16.mxu0 %vm896_vm2, %v1358_v57 }
 0x200   : > { %v1151_v63 = vadd.f32 %v2287_v62, %v2715_v36  ;;  %v1142_v0 = vpop.f32.mrb[63].mxu1  ;;  %2349 = vmatmul.mubr.msk.bf16.gmra.mrb[56].mxu0 %vm896_vm2, %v1359_v56  ;;  %v1312_v2 = vmax.f32 %v1148_v59, 0.0 }
 0x201   : > { %v1143_v1 = vadd.f32 %v2715_v36, %v1142_v0  ;;  %v1310_v4 = vmax.f32 %v1140_v61, 0.0 }
 0x202   : > { %v1313_v3 = vmax.f32 %v1151_v63, 0.0 }
 0x203   : > { %v1311_v5 = vmax.f32 %v1143_v1, 0.0 }
 0x204   : > { %v1361_v6 = vpack.c.bf16 %v1313_v3, %v1312_v2 }
 0x205   : > { %v1360_v7 = vpack.c.bf16 %v1311_v5, %v1310_v4  ;;  %v2290_v8 = vpop.f32.mrb[64].mxu1 }
 0x206   : > { %v1164_v9 = vadd.f32 %v2290_v8, %v2715_v36  ;;  %v1155_v11 = vpop.f32.mrb[65].mxu1 }
 0x207   : > { %v1156_v12 = vadd.f32 %v2715_v36, %v1155_v11  ;;  %v2291_v15 = vpop.f32.mrb[66].mxu1  ;;  %2352 = vmatprep.mubr.msk.bf16.mxu0 %vm896_vm2, %v1360_v7 }
 0x208   : > { %v1167_v17 = vadd.f32 %v2291_v15, %v2715_v36  ;;  %v1158_v18 = vpop.f32.mrb[67].mxu1  ;;  %2353 = vmatmul.mubr.msk.bf16.gmra.mrb[60].mxu0 %vm896_vm2, %v1361_v6  ;;  %v1316_v21 = vmax.f32 %v1164_v9, 0.0 }
 0x209   : > { %v1159_v19 = vadd.f32 %v2715_v36, %v1158_v18  ;;  %v1314_v24 = vmax.f32 %v1156_v12, 0.0 }
 0x20a   : > { %v1317_v22 = vmax.f32 %v1167_v17, 0.0 }
 0x20b   : > { %v1315_v25 = vmax.f32 %v1159_v19, 0.0 }
 0x20c   : > { %v1363_v26 = vpack.c.bf16 %v1317_v22, %v1316_v21 }
 0x20d   : > { %v1362_v23 = vpack.c.bf16 %v1315_v25, %v1314_v24  ;;  %v2294_v20 = vpop.f32.mrb[68].mxu1 }
 0x20e   : > { %v1180_v49 = vadd.f32 %v2294_v20, %v2715_v36  ;;  %v1171_v52 = vpop.f32.mrb[69].mxu1 }
 0x20f   : > { %v1172_v13 = vadd.f32 %v2715_v36, %v1171_v52  ;;  %v2295_v16 = vpop.f32.mrb[70].mxu1  ;;  %2356 = vmatprep.mubr.msk.bf16.mxu0 %vm896_vm2, %v1362_v23 }
 0x210   : > { %v1183_v44 = vadd.f32 %v2295_v16, %v2715_v36  ;;  %v1174_v47 = vpop.f32.mrb[71].mxu1  ;;  %2357 = vmatmul.mubr.msk.bf16.gmra.mrb[64].mxu0 %vm896_vm2, %v1363_v26  ;;  %v1320_v14 = vmax.f32 %v1180_v49, 0.0 }
 0x211   : > { %v1175_v10 = vadd.f32 %v2715_v36, %v1174_v47  ;;  %v1318_v28 = vmax.f32 %v1172_v13, 0.0 }
 0x212   : > { %v1321_v27 = vmax.f32 %v1183_v44, 0.0 }
 0x213   : > { %v1319_v29 = vmax.f32 %v1175_v10, 0.0 }
 0x214   : > { %v1365_v30 = vpack.c.bf16 %v1321_v27, %v1320_v14 }
 0x215   : > { %v1364_v31 = vpack.c.bf16 %v1319_v29, %v1318_v28  ;;  %v2298_v32 = vpop.f32.mrb[72].mxu1 }
 0x216   : > { %v1196_v33 = vadd.f32 %v2298_v32, %v2715_v36  ;;  %v1187_v34 = vpop.f32.mrb[73].mxu1 }
 0x217   : > { %v1188_v35 = vadd.f32 %v2715_v36, %v1187_v34  ;;  %v2299_v37 = vpop.f32.mrb[74].mxu1  ;;  %2360 = vmatprep.mubr.msk.bf16.mxu0 %vm896_vm2, %v1364_v31 }
 0x218   : > { %v1199_v38 = vadd.f32 %v2299_v37, %v2715_v36  ;;  %v1190_v39 = vpop.f32.mrb[75].mxu1  ;;  %2361 = vmatmul.mubr.msk.bf16.gmra.mrb[68].mxu0 %vm896_vm2, %v1365_v30  ;;  %v1324_v41 = vmax.f32 %v1196_v33, 0.0 }
 0x219   : > { %v1191_v40 = vadd.f32 %v2715_v36, %v1190_v39  ;;  %v1322_v43 = vmax.f32 %v1188_v35, 0.0 }
 0x21a   : > { %v1325_v42 = vmax.f32 %v1199_v38, 0.0 }
 0x21b   : > { %v1323_v45 = vmax.f32 %v1191_v40, 0.0 }
 0x21c   : > { %v1367_v46 = vpack.c.bf16 %v1325_v42, %v1324_v41 }
 0x21d   : > { %v1366_v48 = vpack.c.bf16 %v1323_v45, %v1322_v43  ;;  %v2302_v50 = vpop.f32.mrb[76].mxu1 }
 0x21e   : > { %v1212_v51 = vadd.f32 %v2302_v50, %v2715_v36  ;;  %v1203_v53 = vpop.f32.mrb[77].mxu1 }
 0x21f   : > { %v1204_v54 = vadd.f32 %v2715_v36, %v1203_v53  ;;  %v2303_v55 = vpop.f32.mrb[78].mxu1  ;;  %2364 = vmatprep.mubr.msk.bf16.mxu0 %vm896_vm2, %v1366_v48 }
 0x220   : > { %v1215_v56 = vadd.f32 %v2303_v55, %v2715_v36  ;;  %v1206_v57 = vpop.f32.mrb[79].mxu1  ;;  %2365 = vmatmul.mubr.msk.bf16.gmra.mrb[72].mxu0 %vm896_vm2, %v1367_v46  ;;  %v1328_v59 = vmax.f32 %v1212_v51, 0.0 }
 0x221   : > { %v1207_v58 = vadd.f32 %v2715_v36, %v1206_v57  ;;  %v1326_v61 = vmax.f32 %v1204_v54, 0.0 }
 0x222   : > { %v1329_v60 = vmax.f32 %v1215_v56, 0.0 }
 0x223   : > { %v1327_v62 = vmax.f32 %v1207_v58, 0.0  ;;  %v2816_v58 = vld [vmem:[%s3026_s6] ss:$0 sm:$0xff] }
 0x224   : > { %v1369_v63 = vpack.c.bf16 %v1329_v60, %v1328_v59 }
 0x225   : > { %v1368_v0 = vpack.c.bf16 %v1327_v62, %v1326_v61  ;;  %v2306_v1 = vpop.f32.mrb[80].mxu1 }
 0x226   : > { %v1228_v2 = vadd.f32 %v2306_v1, %v2715_v36  ;;  %v1219_v3 = vpop.f32.mrb[81].mxu1 }
 0x227   : > { %v1220_v4 = vadd.f32 %v2715_v36, %v1219_v3  ;;  %v2307_v5 = vpop.f32.mrb[82].mxu1  ;;  %2368 = vmatprep.mubr.msk.bf16.mxu0 %vm896_vm2, %v1368_v0 }
 0x228   : > { %v1231_v6 = vadd.f32 %v2307_v5, %v2715_v36  ;;  %v1222_v7 = vpop.f32.mrb[83].mxu1  ;;  %2369 = vmatmul.mubr.msk.bf16.gmra.mrb[76].mxu0 %vm896_vm2, %v1369_v63  ;;  %v1332_v9 = vmax.f32 %v1228_v2, 0.0 }
 0x229   : > { %v1223_v8 = vadd.f32 %v2715_v36, %v1222_v7  ;;  %v1330_v12 = vmax.f32 %v1220_v4, 0.0 }
 0x22a   : > { %v1333_v11 = vmax.f32 %v1231_v6, 0.0 }
 0x22b   : > { %v1331_v15 = vmax.f32 %v1223_v8, 0.0 }
 0x22c   : > { %v1371_v17 = vpack.c.bf16 %v1333_v11, %v1332_v9 }
 0x22d   : > { %v1370_v18 = vpack.c.bf16 %v1331_v15, %v1330_v12  ;;  %v2310_v19 = vpop.f32.mrb[84].mxu1 }
 0x22e   : > { %v1244_v21 = vadd.f32 %v2310_v19, %v2715_v36  ;;  %v1235_v22 = vpop.f32.mrb[85].mxu1 }
 0x22f   : > { %v1236_v24 = vadd.f32 %v2715_v36, %v1235_v22  ;;  %v2311_v25 = vpop.f32.mrb[86].mxu1  ;;  %2372 = vmatprep.mubr.msk.bf16.mxu0 %vm896_vm2, %v1370_v18 }
 0x230   : > { %v1247_v26 = vadd.f32 %v2311_v25, %v2715_v36  ;;  %v1238_v23 = vpop.f32.mrb[87].mxu1  ;;  %2373 = vmatmul.mubr.msk.bf16.gmra.mrb[80].mxu0 %vm896_vm2, %v1371_v17  ;;  %v1336_v49 = vmax.f32 %v1244_v21, 0.0 }
 0x231   : > { %v1239_v20 = vadd.f32 %v2715_v36, %v1238_v23  ;;  %v1334_v13 = vmax.f32 %v1236_v24, 0.0 }
 0x232   : > { %v1337_v52 = vmax.f32 %v1247_v26, 0.0 }
 0x233   : > { %v1335_v16 = vmax.f32 %v1239_v20, 0.0 }
 0x234   : > { %v1373_v44 = vpack.c.bf16 %v1337_v52, %v1336_v49 }
 0x235   : > { %v1372_v47 = vpack.c.bf16 %v1335_v16, %v1334_v13  ;;  %v2314_v10 = vpop.f32.mrb[88].mxu1 }
 0x236   : > { %v1260_v14 = vadd.f32 %v2314_v10, %v2715_v36  ;;  %v1251_v27 = vpop.f32.mrb[89].mxu1 }
 0x237   : > { %v1252_v28 = vadd.f32 %v2715_v36, %v1251_v27  ;;  %v2315_v29 = vpop.f32.mrb[90].mxu1  ;;  %2376 = vmatprep.mubr.msk.bf16.mxu0 %vm896_vm2, %v1372_v47 }
 0x238   : > { %v1263_v30 = vadd.f32 %v2315_v29, %v2715_v36  ;;  %v1254_v31 = vpop.f32.mrb[91].mxu1  ;;  %2377 = vmatmul.mubr.msk.bf16.gmra.mrb[84].mxu0 %vm896_vm2, %v1373_v44  ;;  %v1340_v33 = vmax.f32 %v1260_v14, 0.0 }
 0x239   : > { %v1255_v32 = vadd.f32 %v2715_v36, %v1254_v31  ;;  %v1338_v35 = vmax.f32 %v1252_v28, 0.0 }
 0x23a   : > { %v1341_v34 = vmax.f32 %v1263_v30, 0.0 }
 0x23b   : > { %v1339_v37 = vmax.f32 %v1255_v32, 0.0 }
 0x23c   : > { %v1375_v38 = vpack.c.bf16 %v1341_v34, %v1340_v33 }
 0x23d   : > { %v1374_v39 = vpack.c.bf16 %v1339_v37, %v1338_v35  ;;  %v2318_v40 = vpop.f32.mrb[92].mxu1 }
 0x23e   : > { %v1276_v41 = vadd.f32 %v2318_v40, %v2715_v36  ;;  %v1267_v42 = vpop.f32.mrb[93].mxu1 }
 0x23f   : > { %v1268_v43 = vadd.f32 %v2715_v36, %v1267_v42  ;;  %v2319_v45 = vpop.f32.mrb[94].mxu1  ;;  %2380 = vmatprep.mubr.msk.bf16.mxu0 %vm896_vm2, %v1374_v39 }
 0x240   : > { %v1279_v46 = vadd.f32 %v2319_v45, %v2715_v36  ;;  %v1270_v48 = vpop.f32.mrb[95].mxu1  ;;  %2381 = vmatmul.mubr.msk.bf16.gmra.mrb[88].mxu0 %vm896_vm2, %v1375_v38  ;;  %v1344_v51 = vmax.f32 %v1276_v41, 0.0 }
 0x241   : > { %v1271_v50 = vadd.f32 %v2715_v36, %v1270_v48  ;;  %v1342_v54 = vmax.f32 %v1268_v43, 0.0 }
 0x242   : > { %v1345_v53 = vmax.f32 %v1279_v46, 0.0 }
 0x243   : > { %v1343_v55 = vmax.f32 %v1271_v50, 0.0 }
 0x244   : > { %v1377_v56 = vpack.c.bf16 %v1345_v53, %v1344_v51 }
 0x245   : > { %v1376_v57 = vpack.c.bf16 %v1343_v55, %v1342_v54 }
 0x247   : > { %2384 = vmatprep.mubr.msk.bf16.mxu0 %vm896_vm2, %v1376_v57 }
 0x248   : > { %2385 = vmatmul.mubr.msk.bf16.gmra.mrb[92].mxu0 %vm896_vm2, %v1377_v56 }
 0x2a3   : > { %v2326_v59 = vpop.f32.mrb[32].mxu0 }
 0x2a4   : > { %v1540_v60 = vadd.f32 %v2326_v59, %v2816_v58  ;;  %v1531_v61 = vpop.f32.mrb[33].mxu0 }
 0x2a5   : > { %v1532_v36 = vadd.f32 %v2816_v58, %v1531_v61  ;;  %v2327_v62 = vpop.f32.mrb[34].mxu0 }
 0x2a6   : > { %v1788_v63 = vmax.f32 %v1540_v60, 0.0  ;;  %v1543_v0 = vadd.f32 %v2327_v62, %v2816_v58  ;;  %v1534_v1 = vpop.f32.mrb[35].mxu0 }
 0x2a7   : > { %v1786_v2 = vmax.f32 %v1532_v36, 0.0  ;;  %v1535_v3 = vadd.f32 %v2816_v58, %v1534_v1 }
 0x2a8   : > { %1853 = vst.msk [vmem:[%s2824_s27 + $0x10] sm:$0xff] %vm1850_vm3, %v1788_v63  ;;  %v1789_v4 = vmax.f32 %v1543_v0, 0.0 }
 0x2a9   : > { %1851 = vst.msk [vmem:[%s2824_s27] sm:$0xff] %vm1850_vm3, %v1786_v2  ;;  %v1787_v5 = vmax.f32 %v1535_v3, 0.0 }
 0x2aa   : > { %1854 = vst.msk [vmem:[%s2824_s27 + $0x18] sm:$0xff] %vm1850_vm3, %v1789_v4 }
 0x2ab   : > { %1852 = vst.msk [vmem:[%s2824_s27 + $0x8] sm:$0xff] %vm1850_vm3, %v1787_v5  ;;  %v2330_v6 = vpop.f32.mrb[36].mxu0 }
 0x2ac   : > { %v1556_v7 = vadd.f32 %v2330_v6, %v2816_v58  ;;  %v1547_v8 = vpop.f32.mrb[37].mxu0 }
 0x2ad   : > { %v1548_v9 = vadd.f32 %v2816_v58, %v1547_v8  ;;  %v2331_v11 = vpop.f32.mrb[38].mxu0 }
 0x2ae   : > { %v1792_v12 = vmax.f32 %v1556_v7, 0.0  ;;  %v1559_v15 = vadd.f32 %v2331_v11, %v2816_v58  ;;  %v1550_v17 = vpop.f32.mrb[39].mxu0 }
 0x2af   : > { %v1790_v18 = vmax.f32 %v1548_v9, 0.0  ;;  %v1551_v19 = vadd.f32 %v2816_v58, %v1550_v17 }
 0x2b0   : > { %1857 = vst.msk [vmem:[%s2824_s27 + $0x30] sm:$0xff] %vm1850_vm3, %v1792_v12  ;;  %v1793_v21 = vmax.f32 %v1559_v15, 0.0 }
 0x2b1   : > { %1855 = vst.msk [vmem:[%s2824_s27 + $0x20] sm:$0xff] %vm1850_vm3, %v1790_v18  ;;  %v1791_v22 = vmax.f32 %v1551_v19, 0.0 }
 0x2b2   : > { %1858 = vst.msk [vmem:[%s2824_s27 + $0x38] sm:$0xff] %vm1850_vm3, %v1793_v21 }
 0x2b3   : > { %1856 = vst.msk [vmem:[%s2824_s27 + $0x28] sm:$0xff] %vm1850_vm3, %v1791_v22  ;;  %v2334_v24 = vpop.f32.mrb[40].mxu0 }
 0x2b4   : > { %v1572_v25 = vadd.f32 %v2334_v24, %v2816_v58  ;;  %v1563_v26 = vpop.f32.mrb[41].mxu0 }
 0x2b5   : > { %v1564_v23 = vadd.f32 %v2816_v58, %v1563_v26  ;;  %v2335_v20 = vpop.f32.mrb[42].mxu0 }
 0x2b6   : > { %v1796_v49 = vmax.f32 %v1572_v25, 0.0  ;;  %v1575_v52 = vadd.f32 %v2335_v20, %v2816_v58  ;;  %v1566_v13 = vpop.f32.mrb[43].mxu0 }
 0x2b7   : > { %v1794_v16 = vmax.f32 %v1564_v23, 0.0  ;;  %v1567_v44 = vadd.f32 %v2816_v58, %v1566_v13 }
 0x2b8   : > { %1861 = vst.msk [vmem:[%s2824_s27 + $0x50] sm:$0xff] %vm1850_vm3, %v1796_v49  ;;  %v1797_v47 = vmax.f32 %v1575_v52, 0.0 }
 0x2b9   : > { %1859 = vst.msk [vmem:[%s2824_s27 + $0x40] sm:$0xff] %vm1850_vm3, %v1794_v16  ;;  %v1795_v10 = vmax.f32 %v1567_v44, 0.0 }
 0x2ba   : > { %1862 = vst.msk [vmem:[%s2824_s27 + $0x58] sm:$0xff] %vm1850_vm3, %v1797_v47 }
 0x2bb   : > { %1860 = vst.msk [vmem:[%s2824_s27 + $0x48] sm:$0xff] %vm1850_vm3, %v1795_v10  ;;  %v2338_v14 = vpop.f32.mrb[44].mxu0 }
 0x2bc   : > { %v1588_v27 = vadd.f32 %v2338_v14, %v2816_v58  ;;  %v1579_v28 = vpop.f32.mrb[45].mxu0 }
 0x2bd   : > { %v1580_v29 = vadd.f32 %v2816_v58, %v1579_v28  ;;  %v2339_v30 = vpop.f32.mrb[46].mxu0 }
 0x2be   : > { %v1800_v31 = vmax.f32 %v1588_v27, 0.0  ;;  %v1591_v32 = vadd.f32 %v2339_v30, %v2816_v58  ;;  %v1582_v33 = vpop.f32.mrb[47].mxu0 }
 0x2bf   : > { %v1798_v34 = vmax.f32 %v1580_v29, 0.0  ;;  %v1583_v35 = vadd.f32 %v2816_v58, %v1582_v33 }
 0x2c0   : > { %1865 = vst.msk [vmem:[%s2824_s27 + $0x70] sm:$0xff] %vm1850_vm3, %v1800_v31  ;;  %v1801_v37 = vmax.f32 %v1591_v32, 0.0 }
 0x2c1   : > { %1863 = vst.msk [vmem:[%s2824_s27 + $0x60] sm:$0xff] %vm1850_vm3, %v1798_v34  ;;  %v1799_v38 = vmax.f32 %v1583_v35, 0.0 }
 0x2c2   : > { %1866 = vst.msk [vmem:[%s2824_s27 + $0x78] sm:$0xff] %vm1850_vm3, %v1801_v37 }
 0x2c3   : > { %1864 = vst.msk [vmem:[%s2824_s27 + $0x68] sm:$0xff] %vm1850_vm3, %v1799_v38  ;;  %v2342_v39 = vpop.f32.mrb[48].mxu0 }
 0x2c4   : > { %v1604_v40 = vadd.f32 %v2342_v39, %v2816_v58  ;;  %v1595_v41 = vpop.f32.mrb[49].mxu0 }
 0x2c5   : > { %v1596_v42 = vadd.f32 %v2816_v58, %v1595_v41  ;;  %v2343_v43 = vpop.f32.mrb[50].mxu0 }
 0x2c6   : > { %v1804_v45 = vmax.f32 %v1604_v40, 0.0  ;;  %v1607_v46 = vadd.f32 %v2343_v43, %v2816_v58  ;;  %v1598_v48 = vpop.f32.mrb[51].mxu0 }
 0x2c7   : > { %v1802_v50 = vmax.f32 %v1596_v42, 0.0  ;;  %v1599_v51 = vadd.f32 %v2816_v58, %v1598_v48 }
 0x2c8   : > { %1869 = vst.msk [vmem:[%s2824_s27 + $0x90] sm:$0xff] %vm1850_vm3, %v1804_v45  ;;  %v1805_v53 = vmax.f32 %v1607_v46, 0.0 }
 0x2c9   : > { %1867 = vst.msk [vmem:[%s2824_s27 + $0x80] sm:$0xff] %vm1850_vm3, %v1802_v50  ;;  %v1803_v54 = vmax.f32 %v1599_v51, 0.0 }
 0x2ca   : > { %1870 = vst.msk [vmem:[%s2824_s27 + $0x98] sm:$0xff] %vm1850_vm3, %v1805_v53 }
 0x2cb   : > { %1868 = vst.msk [vmem:[%s2824_s27 + $0x88] sm:$0xff] %vm1850_vm3, %v1803_v54  ;;  %v2346_v55 = vpop.f32.mrb[52].mxu0 }
 0x2cc   : > { %v1620_v56 = vadd.f32 %v2346_v55, %v2816_v58  ;;  %v1611_v57 = vpop.f32.mrb[53].mxu0 }
 0x2cd   : > { %v1612_v59 = vadd.f32 %v2816_v58, %v1611_v57  ;;  %v2347_v60 = vpop.f32.mrb[54].mxu0 }
 0x2ce   : > { %v1808_v61 = vmax.f32 %v1620_v56, 0.0  ;;  %v1623_v36 = vadd.f32 %v2347_v60, %v2816_v58  ;;  %v1614_v62 = vpop.f32.mrb[55].mxu0 }
 0x2cf   : > { %v1806_v63 = vmax.f32 %v1612_v59, 0.0  ;;  %v1615_v0 = vadd.f32 %v2816_v58, %v1614_v62 }
 0x2d0   : > { %1873 = vst.msk [vmem:[%s2824_s27 + $0xb0] sm:$0xff] %vm1850_vm3, %v1808_v61  ;;  %v1809_v1 = vmax.f32 %v1623_v36, 0.0 }
 0x2d1   : > { %1871 = vst.msk [vmem:[%s2824_s27 + $0xa0] sm:$0xff] %vm1850_vm3, %v1806_v63  ;;  %v1807_v2 = vmax.f32 %v1615_v0, 0.0 }
 0x2d2   : > { %1874 = vst.msk [vmem:[%s2824_s27 + $0xb8] sm:$0xff] %vm1850_vm3, %v1809_v1 }
 0x2d3   : > { %1872 = vst.msk [vmem:[%s2824_s27 + $0xa8] sm:$0xff] %vm1850_vm3, %v1807_v2  ;;  %v2350_v3 = vpop.f32.mrb[56].mxu0 }
 0x2d4   : > { %v1636_v4 = vadd.f32 %v2350_v3, %v2816_v58  ;;  %v1627_v5 = vpop.f32.mrb[57].mxu0 }
 0x2d5   : > { %v1628_v6 = vadd.f32 %v2816_v58, %v1627_v5  ;;  %v2351_v7 = vpop.f32.mrb[58].mxu0 }
 0x2d6   : > { %v1812_v8 = vmax.f32 %v1636_v4, 0.0  ;;  %v1639_v9 = vadd.f32 %v2351_v7, %v2816_v58  ;;  %v1630_v11 = vpop.f32.mrb[59].mxu0 }
 0x2d7   : > { %v1810_v12 = vmax.f32 %v1628_v6, 0.0  ;;  %v1631_v15 = vadd.f32 %v2816_v58, %v1630_v11 }
 0x2d8   : > { %1877 = vst.msk [vmem:[%s2824_s27 + $0xd0] sm:$0xff] %vm1850_vm3, %v1812_v8  ;;  %v1813_v17 = vmax.f32 %v1639_v9, 0.0 }
 0x2d9   : > { %1875 = vst.msk [vmem:[%s2824_s27 + $0xc0] sm:$0xff] %vm1850_vm3, %v1810_v12  ;;  %v1811_v18 = vmax.f32 %v1631_v15, 0.0 }
 0x2da   : > { %1878 = vst.msk [vmem:[%s2824_s27 + $0xd8] sm:$0xff] %vm1850_vm3, %v1813_v17 }
 0x2db   : > { %1876 = vst.msk [vmem:[%s2824_s27 + $0xc8] sm:$0xff] %vm1850_vm3, %v1811_v18  ;;  %v2354_v19 = vpop.f32.mrb[60].mxu0 }
 0x2dc   : > { %v1652_v21 = vadd.f32 %v2354_v19, %v2816_v58  ;;  %v1643_v22 = vpop.f32.mrb[61].mxu0 }
 0x2dd   : > { %v1644_v24 = vadd.f32 %v2816_v58, %v1643_v22  ;;  %v2355_v25 = vpop.f32.mrb[62].mxu0 }
 0x2de   : > { %v1816_v26 = vmax.f32 %v1652_v21, 0.0  ;;  %v1655_v23 = vadd.f32 %v2355_v25, %v2816_v58  ;;  %v1646_v20 = vpop.f32.mrb[63].mxu0 }
 0x2df   : > { %v1814_v49 = vmax.f32 %v1644_v24, 0.0  ;;  %v1647_v52 = vadd.f32 %v2816_v58, %v1646_v20 }
 0x2e0   : > { %1881 = vst.msk [vmem:[%s2824_s27 + $0xf0] sm:$0xff] %vm1850_vm3, %v1816_v26  ;;  %v1817_v13 = vmax.f32 %v1655_v23, 0.0 }
 0x2e1   : > { %1879 = vst.msk [vmem:[%s2824_s27 + $0xe0] sm:$0xff] %vm1850_vm3, %v1814_v49  ;;  %v1815_v16 = vmax.f32 %v1647_v52, 0.0 }
 0x2e2   : > { %1882 = vst.msk [vmem:[%s2824_s27 + $0xf8] sm:$0xff] %vm1850_vm3, %v1817_v13 }
 0x2e3   : > { %1880 = vst.msk [vmem:[%s2824_s27 + $0xe8] sm:$0xff] %vm1850_vm3, %v1815_v16  ;;  %v2358_v44 = vpop.f32.mrb[64].mxu0 }
 0x2e4   : > { %v1668_v47 = vadd.f32 %v2358_v44, %v2816_v58  ;;  %v1659_v10 = vpop.f32.mrb[65].mxu0 }
 0x2e5   : > { %v1660_v14 = vadd.f32 %v2816_v58, %v1659_v10  ;;  %v2359_v27 = vpop.f32.mrb[66].mxu0 }
 0x2e6   : > { %v1820_v28 = vmax.f32 %v1668_v47, 0.0  ;;  %v1671_v29 = vadd.f32 %v2359_v27, %v2816_v58  ;;  %v1662_v30 = vpop.f32.mrb[67].mxu0 }
 0x2e7   : > { %v1818_v31 = vmax.f32 %v1660_v14, 0.0  ;;  %v1663_v32 = vadd.f32 %v2816_v58, %v1662_v30 }
 0x2e8   : > { %1885 = vst.msk [vmem:[%s2824_s27 + $0x110] sm:$0xff] %vm1850_vm3, %v1820_v28  ;;  %v1821_v33 = vmax.f32 %v1671_v29, 0.0 }
 0x2e9   : > { %1883 = vst.msk [vmem:[%s2824_s27 + $0x100] sm:$0xff] %vm1850_vm3, %v1818_v31  ;;  %v1819_v34 = vmax.f32 %v1663_v32, 0.0 }
 0x2ea   : > { %1886 = vst.msk [vmem:[%s2824_s27 + $0x118] sm:$0xff] %vm1850_vm3, %v1821_v33 }
 0x2eb   : > { %1884 = vst.msk [vmem:[%s2824_s27 + $0x108] sm:$0xff] %vm1850_vm3, %v1819_v34  ;;  %v2362_v35 = vpop.f32.mrb[68].mxu0 }
 0x2ec   : > { %v1684_v37 = vadd.f32 %v2362_v35, %v2816_v58  ;;  %v1675_v38 = vpop.f32.mrb[69].mxu0 }
 0x2ed   : > { %v1676_v39 = vadd.f32 %v2816_v58, %v1675_v38  ;;  %v2363_v40 = vpop.f32.mrb[70].mxu0 }
 0x2ee   : > { %v1824_v41 = vmax.f32 %v1684_v37, 0.0  ;;  %v1687_v42 = vadd.f32 %v2363_v40, %v2816_v58  ;;  %v1678_v43 = vpop.f32.mrb[71].mxu0 }
 0x2ef   : > { %v1822_v45 = vmax.f32 %v1676_v39, 0.0  ;;  %v1679_v46 = vadd.f32 %v2816_v58, %v1678_v43 }
 0x2f0   : > { %1889 = vst.msk [vmem:[%s2824_s27 + $0x130] sm:$0xff] %vm1850_vm3, %v1824_v41  ;;  %v1825_v48 = vmax.f32 %v1687_v42, 0.0 }
 0x2f1   : > { %1887 = vst.msk [vmem:[%s2824_s27 + $0x120] sm:$0xff] %vm1850_vm3, %v1822_v45  ;;  %v1823_v50 = vmax.f32 %v1679_v46, 0.0 }
 0x2f2   : > { %1890 = vst.msk [vmem:[%s2824_s27 + $0x138] sm:$0xff] %vm1850_vm3, %v1825_v48 }
 0x2f3   : > { %1888 = vst.msk [vmem:[%s2824_s27 + $0x128] sm:$0xff] %vm1850_vm3, %v1823_v50  ;;  %v2366_v51 = vpop.f32.mrb[72].mxu0 }
 0x2f4   : > { %v1700_v53 = vadd.f32 %v2366_v51, %v2816_v58  ;;  %v1691_v54 = vpop.f32.mrb[73].mxu0 }
 0x2f5   : > { %v1692_v55 = vadd.f32 %v2816_v58, %v1691_v54  ;;  %v2367_v56 = vpop.f32.mrb[74].mxu0 }
 0x2f6   : > { %v1828_v57 = vmax.f32 %v1700_v53, 0.0  ;;  %v1703_v59 = vadd.f32 %v2367_v56, %v2816_v58  ;;  %v1694_v60 = vpop.f32.mrb[75].mxu0 }
 0x2f7   : > { %v1826_v61 = vmax.f32 %v1692_v55, 0.0  ;;  %v1695_v36 = vadd.f32 %v2816_v58, %v1694_v60 }
 0x2f8   : > { %1893 = vst.msk [vmem:[%s2824_s27 + $0x150] sm:$0xff] %vm1850_vm3, %v1828_v57  ;;  %v1829_v62 = vmax.f32 %v1703_v59, 0.0 }
 0x2f9   : > { %1891 = vst.msk [vmem:[%s2824_s27 + $0x140] sm:$0xff] %vm1850_vm3, %v1826_v61  ;;  %v1827_v63 = vmax.f32 %v1695_v36, 0.0 }
 0x2fa   : > { %1894 = vst.msk [vmem:[%s2824_s27 + $0x158] sm:$0xff] %vm1850_vm3, %v1829_v62 }
 0x2fb   : > { %1892 = vst.msk [vmem:[%s2824_s27 + $0x148] sm:$0xff] %vm1850_vm3, %v1827_v63  ;;  %v2370_v0 = vpop.f32.mrb[76].mxu0 }
 0x2fc   : > { %v1716_v1 = vadd.f32 %v2370_v0, %v2816_v58  ;;  %v1707_v2 = vpop.f32.mrb[77].mxu0 }
 0x2fd   : > { %v1708_v3 = vadd.f32 %v2816_v58, %v1707_v2  ;;  %v2371_v4 = vpop.f32.mrb[78].mxu0 }
 0x2fe   : > { %v1832_v5 = vmax.f32 %v1716_v1, 0.0  ;;  %v1719_v6 = vadd.f32 %v2371_v4, %v2816_v58  ;;  %v1710_v7 = vpop.f32.mrb[79].mxu0 }
 0x2ff   : > { %v1830_v8 = vmax.f32 %v1708_v3, 0.0  ;;  %v1711_v9 = vadd.f32 %v2816_v58, %v1710_v7 }
 0x300   : > { %1897 = vst.msk [vmem:[%s2824_s27 + $0x170] sm:$0xff] %vm1850_vm3, %v1832_v5  ;;  %v1833_v11 = vmax.f32 %v1719_v6, 0.0 }
 0x301   : > { %1895 = vst.msk [vmem:[%s2824_s27 + $0x160] sm:$0xff] %vm1850_vm3, %v1830_v8  ;;  %v1831_v12 = vmax.f32 %v1711_v9, 0.0 }
 0x302   : > { %1898 = vst.msk [vmem:[%s2824_s27 + $0x178] sm:$0xff] %vm1850_vm3, %v1833_v11 }
 0x303   : > { %1896 = vst.msk [vmem:[%s2824_s27 + $0x168] sm:$0xff] %vm1850_vm3, %v1831_v12  ;;  %v2374_v15 = vpop.f32.mrb[80].mxu0 }
 0x304   : > { %v1732_v17 = vadd.f32 %v2374_v15, %v2816_v58  ;;  %v1723_v18 = vpop.f32.mrb[81].mxu0 }
 0x305   : > { %v1724_v19 = vadd.f32 %v2816_v58, %v1723_v18  ;;  %v2375_v21 = vpop.f32.mrb[82].mxu0 }
 0x306   : > { %v1836_v22 = vmax.f32 %v1732_v17, 0.0  ;;  %v1735_v24 = vadd.f32 %v2375_v21, %v2816_v58  ;;  %v1726_v25 = vpop.f32.mrb[83].mxu0 }
 0x307   : > { %v1834_v26 = vmax.f32 %v1724_v19, 0.0  ;;  %v1727_v23 = vadd.f32 %v2816_v58, %v1726_v25 }
 0x308   : > { %1901 = vst.msk [vmem:[%s2824_s27 + $0x190] sm:$0xff] %vm1850_vm3, %v1836_v22  ;;  %v1837_v20 = vmax.f32 %v1735_v24, 0.0 }
 0x309   : > { %1899 = vst.msk [vmem:[%s2824_s27 + $0x180] sm:$0xff] %vm1850_vm3, %v1834_v26  ;;  %v1835_v49 = vmax.f32 %v1727_v23, 0.0 }
 0x30a   : > { %1902 = vst.msk [vmem:[%s2824_s27 + $0x198] sm:$0xff] %vm1850_vm3, %v1837_v20 }
 0x30b   : > { %1900 = vst.msk [vmem:[%s2824_s27 + $0x188] sm:$0xff] %vm1850_vm3, %v1835_v49  ;;  %v2378_v52 = vpop.f32.mrb[84].mxu0 }
 0x30c   : > { %v1748_v13 = vadd.f32 %v2378_v52, %v2816_v58  ;;  %v1739_v16 = vpop.f32.mrb[85].mxu0 }
 0x30d   : > { %v1740_v44 = vadd.f32 %v2816_v58, %v1739_v16  ;;  %v2379_v47 = vpop.f32.mrb[86].mxu0 }
 0x30e   : > { %v1840_v10 = vmax.f32 %v1748_v13, 0.0  ;;  %v1751_v14 = vadd.f32 %v2379_v47, %v2816_v58  ;;  %v1742_v27 = vpop.f32.mrb[87].mxu0 }
 0x30f   : > { %v1838_v28 = vmax.f32 %v1740_v44, 0.0  ;;  %v1743_v29 = vadd.f32 %v2816_v58, %v1742_v27 }
 0x310   : > { %1905 = vst.msk [vmem:[%s2824_s27 + $0x1b0] sm:$0xff] %vm1850_vm3, %v1840_v10  ;;  %v1841_v30 = vmax.f32 %v1751_v14, 0.0 }
 0x311   : > { %1903 = vst.msk [vmem:[%s2824_s27 + $0x1a0] sm:$0xff] %vm1850_vm3, %v1838_v28  ;;  %v1839_v31 = vmax.f32 %v1743_v29, 0.0 }
 0x312   : > { %1906 = vst.msk [vmem:[%s2824_s27 + $0x1b8] sm:$0xff] %vm1850_vm3, %v1841_v30 }
 0x313   : > { %1904 = vst.msk [vmem:[%s2824_s27 + $0x1a8] sm:$0xff] %vm1850_vm3, %v1839_v31  ;;  %v2382_v32 = vpop.f32.mrb[88].mxu0 }
 0x314   : > { %v1764_v33 = vadd.f32 %v2382_v32, %v2816_v58  ;;  %v1755_v34 = vpop.f32.mrb[89].mxu0 }
 0x315   : > { %v1756_v35 = vadd.f32 %v2816_v58, %v1755_v34  ;;  %v2383_v37 = vpop.f32.mrb[90].mxu0 }
 0x316   : > { %v1844_v38 = vmax.f32 %v1764_v33, 0.0  ;;  %v1767_v39 = vadd.f32 %v2383_v37, %v2816_v58  ;;  %v1758_v40 = vpop.f32.mrb[91].mxu0 }
 0x317   : > { %v1842_v41 = vmax.f32 %v1756_v35, 0.0  ;;  %v1759_v42 = vadd.f32 %v2816_v58, %v1758_v40 }
 0x318   : > { %1909 = vst.msk [vmem:[%s2824_s27 + $0x1d0] sm:$0xff] %vm1850_vm3, %v1844_v38  ;;  %v1845_v43 = vmax.f32 %v1767_v39, 0.0 }
 0x319   : > { %1907 = vst.msk [vmem:[%s2824_s27 + $0x1c0] sm:$0xff] %vm1850_vm3, %v1842_v41  ;;  %v1843_v45 = vmax.f32 %v1759_v42, 0.0 }
 0x31a   : > { %1910 = vst.msk [vmem:[%s2824_s27 + $0x1d8] sm:$0xff] %vm1850_vm3, %v1845_v43 }
 0x31b   : > { %1908 = vst.msk [vmem:[%s2824_s27 + $0x1c8] sm:$0xff] %vm1850_vm3, %v1843_v45  ;;  %v2386_v46 = vpop.f32.mrb[92].mxu0 }
 0x31c   : > { %v1780_v48 = vadd.f32 %v2386_v46, %v2816_v58  ;;  %v1771_v50 = vpop.f32.mrb[93].mxu0 }
 0x31d   : > { %v1772_v51 = vadd.f32 %v2816_v58, %v1771_v50  ;;  %v2387_v53 = vpop.f32.mrb[94].mxu0 }
 0x31e   : > { %v1848_v54 = vmax.f32 %v1780_v48, 0.0  ;;  %v1783_v55 = vadd.f32 %v2387_v53, %v2816_v58  ;;  %v1774_v56 = vpop.f32.mrb[95].mxu0 }
 0x31f   : > { %v1846_v57 = vmax.f32 %v1772_v51, 0.0  ;;  %v1775_v59 = vadd.f32 %v2816_v58, %v1774_v56 }
 0x320   : > { %1913 = vst.msk [vmem:[%s2824_s27 + $0x1f0] sm:$0xff] %vm1850_vm3, %v1848_v54  ;;  %v1849_v60 = vmax.f32 %v1783_v55, 0.0 }
 0x321   : > { %1911 = vst.msk [vmem:[%s2824_s27 + $0x1e0] sm:$0xff] %vm1850_vm3, %v1846_v57  ;;  %v1847_v61 = vmax.f32 %v1775_v59, 0.0 }
 0x322   : > { %1914 = vst.msk [vmem:[%s2824_s27 + $0x1f8] sm:$0xff] %vm1850_vm3, %v1849_v60 }
 0x323   : > { %1912 = vst.msk [vmem:[%s2824_s27 + $0x1e8] sm:$0xff] %vm1850_vm3, %v1847_v61 }
 0x324 PF: > { %s17_s24 = sadd.s32 1, %s2410_s24  }
 0x325   : > { %p14_p4 = scmp.ge.s32.totalorder %s17_s24, 18  }
 0x327   :  { %16 = sbr.rel (!%p14_p4) target bundleno = 1 (0x1), region = 78 }

</bundles_post_ra>
